<compile_context>
chip_gen: v5e
topology: v5e:2x2
jax: 0.10.0
libtpu: 0.0.40
codegen_flags: <defaults>
</compile_context>

<pallas_src>
import functools

import jax
import jax.numpy as jnp
import numpy as np
from jax.experimental import pallas as pl
from jax.experimental.pallas import tpu as pltpu


# ----------------------------- helpers ---------------------------------------

def _round_up(v, m):
    return ((v + m - 1) // m) * m


def _choose_m_tiling(m, tile_max=512):
    """Pad M to a multiple of 16 (bf16 sublane pack) and pick the M tile."""
    mp = _round_up(max(m, 16), 16)
    if mp <= tile_max:
        return mp, mp
    mp = _round_up(m, tile_max)
    return mp, tile_max


# ----------------------------- Pallas kernels --------------------------------

def _matmul_bias_relu_kernel(x_ref, w_ref, b_ref, o_ref, *, relu):
    # x: (tm, Kp) bf16, w: (Kp, Np) bf16, b: (1, Np) f32, o: (tm, Np)
    acc = jnp.dot(x_ref[...], w_ref[...], preferred_element_type=jnp.float32)
    acc = acc + b_ref[...]
    if relu:
        acc = jnp.maximum(acc, 0.0)
    o_ref[...] = acc.astype(o_ref.dtype)


def _fc_fused_kernel(x_ref, w1_ref, b1_ref, w2_ref, b2_ref, o_ref):
    # fc1 -> ReLU -> fc2, hidden stays in VMEM/registers.
    h = jnp.dot(x_ref[...], w1_ref[...], preferred_element_type=jnp.float32)
    h = jnp.maximum(h + b1_ref[...], 0.0)
    o = jnp.dot(h.astype(w2_ref.dtype), w2_ref[...],
                preferred_element_type=jnp.float32)
    o_ref[...] = (o + b2_ref[...]).astype(o_ref.dtype)


# ----------------------------- Pallas wrappers --------------------------------

def pallas_matmul_bias(x, w, b, *, relu, out_dtype):
    """y = relu?(x @ w + b), M-tiled grid, bf16 operands, f32 accumulate.

    x: (M, Kp) (any float dtype; cast to bf16), w: (Kp, Np) bf16 (pre-padded),
    b: (1, Np) f32 (pre-padded).  Returns (M, Np) out_dtype.
    """
    m, kp = x.shape
    kw, np_ = w.shape
    assert kp == kw, (kp, kw)

    xp = x.astype(jnp.bfloat16)
    mp, tile_m = _choose_m_tiling(m)
    if mp != m:
        xp = jnp.pad(xp, ((0, mp - m), (0, 0)))

    out_bytes = mp * np_ * jnp.dtype(out_dtype).itemsize
    cost = pl.CostEstimate(
        flops=2 * mp * kp * np_,
        transcendentals=0,
        bytes_accessed=mp * kp * 2 + kp * np_ * 2 + np_ * 4 + out_bytes,
    )

    out = pl.pallas_call(
        functools.partial(_matmul_bias_relu_kernel, relu=relu),
        out_shape=jax.ShapeDtypeStruct((mp, np_), out_dtype),
        grid=(mp // tile_m,),
        in_specs=[
            pl.BlockSpec((tile_m, kp), lambda i: (i, 0)),
            pl.BlockSpec((kp, np_), lambda i: (0, 0)),
            pl.BlockSpec((1, np_), lambda i: (0, 0)),
        ],
        out_specs=pl.BlockSpec((tile_m, np_), lambda i: (i, 0)),
        compiler_params=pltpu.CompilerParams(
            dimension_semantics=("parallel",)),
        cost_estimate=cost,
    )(xp, w, b)
    return out[:m]


def pallas_fc_fused(flat, w1, b1, w2, b2, n_actions):
    """Fused fc1(+ReLU)+fc2 in one pallas_call. Returns (M, n_actions) f32."""
    m, k = flat.shape
    k1p, n1 = w1.shape
    _, n2p = w2.shape

    x = flat.astype(jnp.bfloat16)
    if k1p != k:
        x = jnp.pad(x, ((0, 0), (0, k1p - k)))
    mp, tile_m = _choose_m_tiling(m)
    if mp != m:
        x = jnp.pad(x, ((0, mp - m), (0, 0)))

    cost = pl.CostEstimate(
        flops=2 * mp * (k1p * n1 + n1 * n2p),
        transcendentals=0,
        bytes_accessed=(mp * k1p * 2 + k1p * n1 * 2 + n1 * n2p * 2
                        + (n1 + n2p) * 4 + mp * n2p * 4),
    )

    out = pl.pallas_call(
        _fc_fused_kernel,
        out_shape=jax.ShapeDtypeStruct((mp, n2p), jnp.float32),
        grid=(mp // tile_m,),
        in_specs=[
            pl.BlockSpec((tile_m, k1p), lambda i: (i, 0)),
            pl.BlockSpec((k1p, n1), lambda i: (0, 0)),
            pl.BlockSpec((1, n1), lambda i: (0, 0)),
            pl.BlockSpec((n1, n2p), lambda i: (0, 0)),
            pl.BlockSpec((1, n2p), lambda i: (0, 0)),
        ],
        out_specs=pl.BlockSpec((tile_m, n2p), lambda i: (i, 0)),
        compiler_params=pltpu.CompilerParams(
            dimension_semantics=("parallel",)),
        cost_estimate=cost,
    )(x, w1, b1, w2, b2)
    return out[:m, :n_actions]


# ------------------------------ Conv via im2col (NHWC) ------------------------

def _im2col_nhwc(x, k, stride):
    """x: (N, H, W, C) -> (N*OH*OW, K*K*C), feature order (kh, kw, c)."""
    n, h, w, c = x.shape
    oh = (h - k) // stride + 1
    ow = (w - k) // stride + 1
    cols = []
    for i in range(k):
        for j in range(k):
            cols.append(x[:, i:i + stride * oh:stride,
                          j:j + stride * ow:stride, :])
    p = jnp.concatenate(cols, axis=-1)          # (N, OH, OW, K*K*C)
    return p.reshape(n * oh * ow, k * k * c), oh, ow


def conv2d_pallas_nhwc(x, w_packed, b_packed, cout, *, ksize, stride):
    """Conv2d (VALID, no padding), NHWC in / NHWC out, ReLU fused."""
    n = x.shape[0]
    patches, oh, ow = _im2col_nhwc(x, ksize, stride)     # (M, K*K*C)
    m, k = patches.shape
    kp = w_packed.shape[0]
    if kp != k:                                           # align K to 128
        patches = jnp.pad(patches, ((0, 0), (0, kp - k)))
    y = pallas_matmul_bias(patches, w_packed, b_packed,
                           relu=True, out_dtype=jnp.bfloat16)
    return y[:, :cout].reshape(n, oh, ow, cout)


# ------------------------------ Params ----------------------------------------

def dqn_init_params(key, input_shape, n_actions):
    """Random params in PyTorch layout (used by the pure-JAX reference)."""
    c, h, _ = input_shape
    o1 = (h - 8) // 4 + 1
    o2 = (o1 - 4) // 2 + 1
    o3 = (o2 - 3) // 1 + 1
    conv_out_size = 64 * o3 * o3

    ks = jax.random.split(key, 10)
    scale = 0.05
    params = {
        "w1": scale * jax.random.normal(ks[0], (32, c, 8, 8), jnp.float32),
        "b1": scale * jax.random.normal(ks[1], (32,), jnp.float32),
        "w2": scale * jax.random.normal(ks[2], (64, 32, 4, 4), jnp.float32),
        "b2": scale * jax.random.normal(ks[3], (64,), jnp.float32),
        "w3": scale * jax.random.normal(ks[4], (64, 64, 3, 3), jnp.float32),
        "b3": scale * jax.random.normal(ks[5], (64,), jnp.float32),
        "wfc1": scale * jax.random.normal(ks[6], (512, conv_out_size), jnp.float32),
        "bfc1": scale * jax.random.normal(ks[7], (512,), jnp.float32),
        "wfc2": scale * jax.random.normal(ks[8], (n_actions, 512), jnp.float32),
        "bfc2": scale * jax.random.normal(ks[9], (n_actions,), jnp.float32),
    }
    return params, conv_out_size


def dqn_prepare_params(params, input_shape, n_actions):
    """One-time weight preprocessing: transpose / permute / pad / cast bf16."""
    _, h, _ = input_shape
    o1 = (h - 8) // 4 + 1
    o2 = (o1 - 4) // 2 + 1
    o3 = (o2 - 3) // 1 + 1
    conv_out = 64 * o3 * o3

    def prep_conv(w, b):
        cout, cin, k, _ = w.shape
        kf = k * k * cin
        wf = jnp.transpose(w, (2, 3, 1, 0)).reshape(kf, cout)  # (kh,kw,cin) rows
        kp = _round_up(kf, 128)
        np_ = _round_up(max(cout, 128), 128)
        wf = jnp.pad(wf, ((0, kp - kf), (0, np_ - cout))).astype(jnp.bfloat16)
        bf = jnp.pad(b.astype(jnp.float32), (0, np_ - cout)).reshape(1, np_)
        return wf, bf

    w1, b1 = prep_conv(params["w1"], params["b1"])
    w2, b2 = prep_conv(params["w2"], params["b2"])
    w3, b3 = prep_conv(params["w3"], params["b3"])

    # fc1: permute columns from NCHW-flatten order to NHWC-flatten order.
    wfc1 = params["wfc1"].reshape(512, 64, o3, o3)
    wfc1 = jnp.transpose(wfc1, (0, 2, 3, 1)).reshape(512, conv_out).T  # (K1,512)
    k1p = _round_up(conv_out, 128)
    wfc1 = jnp.pad(wfc1, ((0, k1p - conv_out), (0, 0))).astype(jnp.bfloat16)
    bfc1 = params["bfc1"].astype(jnp.float32).reshape(1, 512)

    wfc2 = params["wfc2"].T                                   # (512, n_actions)
    n2p = _round_up(max(n_actions, 128), 128)
    wfc2 = jnp.pad(wfc2, ((0, 0), (0, n2p - n_actions))).astype(jnp.bfloat16)
    bfc2 = jnp.pad(params["bfc2"].astype(jnp.float32),
                   (0, n2p - n_actions)).reshape(1, n2p)

    return {"w1": w1, "b1": b1, "w2": w2, "b2": b2, "w3": w3, "b3": b3,
            "wfc1": wfc1, "bfc1": bfc1, "wfc2": wfc2, "bfc2": bfc2}


# ------------------------------ DQN forward ------------------------------------

def dqn_forward(x, prep, n_actions):
    # x: (N, C, H, W) f32 (PyTorch convention).  Single layout change here.
    xh = jnp.transpose(x, (0, 2, 3, 1)).astype(jnp.bfloat16)     # NHWC bf16
    h = conv2d_pallas_nhwc(xh, prep["w1"], prep["b1"], 32, ksize=8, stride=4)
    h = conv2d_pallas_nhwc(h, prep["w2"], prep["b2"], 64, ksize=4, stride=2)
    h = conv2d_pallas_nhwc(h, prep["w3"], prep["b3"], 64, ksize=3, stride=1)
    flat = h.reshape(x.shape[0], -1)   # NHWC flatten; fc1 weight pre-permuted
    return pallas_fc_fused(flat, prep["wfc1"], prep["bfc1"],
                           prep["wfc2"], prep["bfc2"], n_actions)


# ------------------------------ Reference (pure JAX, f32) -----------------------

def _ref_conv(x, w, b, stride):
    y = jax.lax.conv_general_dilated(
        x, w, window_strides=(stride, stride), padding="VALID",
        dimension_numbers=("NCHW", "OIHW", "NCHW"),
        precision=jax.lax.Precision.HIGHEST)
    return y + b[None, :, None, None]


def dqn_forward_ref(x, params):
    h = jnp.maximum(_ref_conv(x, params["w1"], params["b1"], 4), 0.0)
    h = jnp.maximum(_ref_conv(h, params["w2"], params["b2"], 2), 0.0)
    h = jnp.maximum(_ref_conv(h, params["w3"], params["b3"], 1), 0.0)
    flat = h.reshape(x.shape[0], -1)
    h = jnp.maximum(flat @ params["wfc1"].T + params["bfc1"], 0.0)
    return h @ params["wfc2"].T + params["bfc2"]


# ---------------------------------- Main ----------------------------------------

if __name__ == "__main__":
    # Conv stack (k8/s4 -> k4/s2 -> k3/s1) needs spatial >= 36; use 44 so
    # conv_out = 64 * 2 * 2 = 256.
    batch, channels, spatial, n_actions = 2, 4, 44, 6
    input_shape = (channels, spatial, spatial)

    key = jax.random.PRNGKey(0)
    pkey, xkey = jax.random.split(key)
    params, conv_out_size = dqn_init_params(pkey, input_shape, n_actions)
    prep = dqn_prepare_params(params, input_shape, n_actions)
    x = jax.random.normal(xkey, (batch, channels, spatial, spatial), jnp.float32)

    fwd = jax.jit(functools.partial(dqn_forward, n_actions=n_actions))
    out = jax.block_until_ready(fwd(x, prep))
    assert out.shape == (batch, n_actions), out.shape

    ref = jax.block_until_ready(dqn_forward_ref(x, params))
    # bf16 operands / f32 accumulation vs f32 reference.
    np.testing.assert_allclose(np.asarray(out), np.asarray(ref),
                               rtol=3e-2, atol=3e-2)

    print("KERNEL_OK")
</pallas_src>

<mosaic_0001>
module attributes {stable_mosaic.version = 11 : i64} {
  func.func @_matmul_bias_relu_kernel(%arg0: i32, %arg1: memref<208x256xbf16, #tpu.memory_space<vmem>>, %arg2: memref<256x128xbf16, #tpu.memory_space<vmem>>, %arg3: memref<1x128xf32, #tpu.memory_space<vmem>>, %arg4: memref<208x128xbf16, #tpu.memory_space<vmem>>) attributes {dimension_semantics = [#tpu.dimension_semantics<parallel>], iteration_bounds = array<i64: 1>, scalar_prefetch = 0 : i64, scratch_operands = 0 : i64, tpu.core_type = #tpu.core_type<tc>, window_params = [{transform_indices = @transform_0, window_bounds = array<i64: 208, 256>}, {pipeline_mode = #tpu.pipeline_mode<synchronous>, transform_indices = @transform_1, window_bounds = array<i64: 256, 128>}, {pipeline_mode = #tpu.pipeline_mode<synchronous>, transform_indices = @transform_2, window_bounds = array<i64: 1, 128>}, {transform_indices = @transform_3, window_bounds = array<i64: 208, 128>}]} {
    %c0 = arith.constant 0 : index
    %c0_0 = arith.constant 0 : index
    %0 = vector.load %arg1[%c0, %c0_0] : memref<208x256xbf16, #tpu.memory_space<vmem>>, vector<208x256xbf16>
    %c0_1 = arith.constant 0 : index
    %c0_2 = arith.constant 0 : index
    %1 = vector.load %arg2[%c0_1, %c0_2] : memref<256x128xbf16, #tpu.memory_space<vmem>>, vector<256x128xbf16>
    %cst = arith.constant dense<0.000000e+00> : vector<208x128xf32>
    %2 = tpu.matmul %0, %1, %cst {dimension_numbers = #tpu.dot_dimension_numbers<[1], [0], [0], [1], [0, 0, 1, 1], [], []>} : vector<208x256xbf16>, vector<256x128xbf16>, vector<208x128xf32> -> vector<208x128xf32>
    %c0_3 = arith.constant 0 : index
    %c0_4 = arith.constant 0 : index
    %3 = vector.load %arg3[%c0_3, %c0_4] : memref<1x128xf32, #tpu.memory_space<vmem>>, vector<1x128xf32>
    %4 = vector.broadcast %3 : vector<1x128xf32> to vector<208x128xf32>
    %5 = arith.addf %2, %4 : vector<208x128xf32>
    %cst_5 = arith.constant 0.000000e+00 : f32
    %6 = vector.broadcast %cst_5 : f32 to vector<208x128xf32>
    %7 = arith.maximumf %5, %6 : vector<208x128xf32>
    %8 = arith.truncf %7 : vector<208x128xf32> to vector<208x128xbf16>
    %c0_6 = arith.constant 0 : index
    %c0_7 = arith.constant 0 : index
    %9 = vector.load %arg4[%c0_6, %c0_7] : memref<208x128xbf16, #tpu.memory_space<vmem>>, vector<208x128xbf16>
    tpu.vector_store %arg4[%c0_6, %c0_7], %8 {strides = array<i32>} : memref<208x128xbf16, #tpu.memory_space<vmem>>, vector<208x128xbf16>,
    return
  }
  func.func @transform_0(%arg0: i32) -> (i32, i32) {
    %c0_i32 = arith.constant 0 : i32
    %c0_i32_0 = arith.constant 0 : i32
    return %arg0, %c0_i32 : i32, i32
  }
  func.func @transform_1(%arg0: i32) -> (i32, i32) {
    %c0_i32 = arith.constant 0 : i32
    %c0_i32_0 = arith.constant 0 : i32
    %c0_i32_1 = arith.constant 0 : i32
    return %c0_i32, %c0_i32_0 : i32, i32
  }
  func.func @transform_2(%arg0: i32) -> (i32, i32) {
    %c0_i32 = arith.constant 0 : i32
    %c0_i32_0 = arith.constant 0 : i32
    %c0_i32_1 = arith.constant 0 : i32
    return %c0_i32, %c0_i32_0 : i32, i32
  }
  func.func @transform_3(%arg0: i32) -> (i32, i32) {
    %c0_i32 = arith.constant 0 : i32
    %c0_i32_0 = arith.constant 0 : i32
    return %arg0, %c0_i32 : i32, i32
  }
}

module attributes {stable_mosaic.version = 11 : i64} {
  func.func @_matmul_bias_relu_kernel(%arg0: i32, %arg1: memref<32x512xbf16, #tpu.memory_space<vmem>>, %arg2: memref<512x128xbf16, #tpu.memory_space<vmem>>, %arg3: memref<1x128xf32, #tpu.memory_space<vmem>>, %arg4: memref<32x128xbf16, #tpu.memory_space<vmem>>) attributes {dimension_semantics = [#tpu.dimension_semantics<parallel>], iteration_bounds = array<i64: 1>, scalar_prefetch = 0 : i64, scratch_operands = 0 : i64, tpu.core_type = #tpu.core_type<tc>, window_params = [{transform_indices = @transform_0, window_bounds = array<i64: 32, 512>}, {pipeline_mode = #tpu.pipeline_mode<synchronous>, transform_indices = @transform_1, window_bounds = array<i64: 512, 128>}, {pipeline_mode = #tpu.pipeline_mode<synchronous>, transform_indices = @transform_2, window_bounds = array<i64: 1, 128>}, {transform_indices = @transform_3, window_bounds = array<i64: 32, 128>}]} {
    %c0 = arith.constant 0 : index
    %c0_0 = arith.constant 0 : index
    %0 = vector.load %arg1[%c0, %c0_0] : memref<32x512xbf16, #tpu.memory_space<vmem>>, vector<32x512xbf16>
    %c0_1 = arith.constant 0 : index
    %c0_2 = arith.constant 0 : index
    %1 = vector.load %arg2[%c0_1, %c0_2] : memref<512x128xbf16, #tpu.memory_space<vmem>>, vector<512x128xbf16>
    %cst = arith.constant dense<0.000000e+00> : vector<32x128xf32>
    %2 = tpu.matmul %0, %1, %cst {dimension_numbers = #tpu.dot_dimension_numbers<[1], [0], [0], [1], [0, 0, 1, 1], [], []>} : vector<32x512xbf16>, vector<512x128xbf16>, vector<32x128xf32> -> vector<32x128xf32>
    %c0_3 = arith.constant 0 : index
    %c0_4 = arith.constant 0 : index
    %3 = vector.load %arg3[%c0_3, %c0_4] : memref<1x128xf32, #tpu.memory_space<vmem>>, vector<1x128xf32>
    %4 = vector.broadcast %3 : vector<1x128xf32> to vector<32x128xf32>
    %5 = arith.addf %2, %4 : vector<32x128xf32>
    %cst_5 = arith.constant 0.000000e+00 : f32
    %6 = vector.broadcast %cst_5 : f32 to vector<32x128xf32>
    %7 = arith.maximumf %5, %6 : vector<32x128xf32>
    %8 = arith.truncf %7 : vector<32x128xf32> to vector<32x128xbf16>
    %c0_6 = arith.constant 0 : index
    %c0_7 = arith.constant 0 : index
    %9 = vector.load %arg4[%c0_6, %c0_7] : memref<32x128xbf16, #tpu.memory_space<vmem>>, vector<32x128xbf16>
    tpu.vector_store %arg4[%c0_6, %c0_7], %8 {strides = array<i32>} : memref<32x128xbf16, #tpu.memory_space<vmem>>, vector<32x128xbf16>,
    return
  }
  func.func @transform_0(%arg0: i32) -> (i32, i32) {
    %c0_i32 = arith.constant 0 : i32
    %c0_i32_0 = arith.constant 0 : i32
    return %arg0, %c0_i32 : i32, i32
  }
  func.func @transform_1(%arg0: i32) -> (i32, i32) {
    %c0_i32 = arith.constant 0 : i32
    %c0_i32_0 = arith.constant 0 : i32
    %c0_i32_1 = arith.constant 0 : i32
    return %c0_i32, %c0_i32_0 : i32, i32
  }
  func.func @transform_2(%arg0: i32) -> (i32, i32) {
    %c0_i32 = arith.constant 0 : i32
    %c0_i32_0 = arith.constant 0 : i32
    %c0_i32_1 = arith.constant 0 : i32
    return %c0_i32, %c0_i32_0 : i32, i32
  }
  func.func @transform_3(%arg0: i32) -> (i32, i32) {
    %c0_i32 = arith.constant 0 : i32
    %c0_i32_0 = arith.constant 0 : i32
    return %arg0, %c0_i32 : i32, i32
  }
}

module attributes {stable_mosaic.version = 11 : i64} {
  func.func @_matmul_bias_relu_kernel(%arg0: i32, %arg1: memref<16x640xbf16, #tpu.memory_space<vmem>>, %arg2: memref<640x128xbf16, #tpu.memory_space<vmem>>, %arg3: memref<1x128xf32, #tpu.memory_space<vmem>>, %arg4: memref<16x128xbf16, #tpu.memory_space<vmem>>) attributes {dimension_semantics = [#tpu.dimension_semantics<parallel>], iteration_bounds = array<i64: 1>, scalar_prefetch = 0 : i64, scratch_operands = 0 : i64, tpu.core_type = #tpu.core_type<tc>, window_params = [{transform_indices = @transform_0, window_bounds = array<i64: 16, 640>}, {pipeline_mode = #tpu.pipeline_mode<synchronous>, transform_indices = @transform_1, window_bounds = array<i64: 640, 128>}, {pipeline_mode = #tpu.pipeline_mode<synchronous>, transform_indices = @transform_2, window_bounds = array<i64: 1, 128>}, {transform_indices = @transform_3, window_bounds = array<i64: 16, 128>}]} {
    %c0 = arith.constant 0 : index
    %c0_0 = arith.constant 0 : index
    %0 = vector.load %arg1[%c0, %c0_0] : memref<16x640xbf16, #tpu.memory_space<vmem>>, vector<16x640xbf16>
    %c0_1 = arith.constant 0 : index
    %c0_2 = arith.constant 0 : index
    %1 = vector.load %arg2[%c0_1, %c0_2] : memref<640x128xbf16, #tpu.memory_space<vmem>>, vector<640x128xbf16>
    %cst = arith.constant dense<0.000000e+00> : vector<16x128xf32>
    %2 = tpu.matmul %0, %1, %cst {dimension_numbers = #tpu.dot_dimension_numbers<[1], [0], [0], [1], [0, 0, 1, 1], [], []>} : vector<16x640xbf16>, vector<640x128xbf16>, vector<16x128xf32> -> vector<16x128xf32>
    %c0_3 = arith.constant 0 : index
    %c0_4 = arith.constant 0 : index
    %3 = vector.load %arg3[%c0_3, %c0_4] : memref<1x128xf32, #tpu.memory_space<vmem>>, vector<1x128xf32>
    %4 = vector.broadcast %3 : vector<1x128xf32> to vector<16x128xf32>
    %5 = arith.addf %2, %4 : vector<16x128xf32>
    %cst_5 = arith.constant 0.000000e+00 : f32
    %6 = vector.broadcast %cst_5 : f32 to vector<16x128xf32>
    %7 = arith.maximumf %5, %6 : vector<16x128xf32>
    %8 = arith.truncf %7 : vector<16x128xf32> to vector<16x128xbf16>
    %c0_6 = arith.constant 0 : index
    %c0_7 = arith.constant 0 : index
    %9 = vector.load %arg4[%c0_6, %c0_7] : memref<16x128xbf16, #tpu.memory_space<vmem>>, vector<16x128xbf16>
    tpu.vector_store %arg4[%c0_6, %c0_7], %8 {strides = array<i32>} : memref<16x128xbf16, #tpu.memory_space<vmem>>, vector<16x128xbf16>,
    return
  }
  func.func @transform_0(%arg0: i32) -> (i32, i32) {
    %c0_i32 = arith.constant 0 : i32
    %c0_i32_0 = arith.constant 0 : i32
    return %arg0, %c0_i32 : i32, i32
  }
  func.func @transform_1(%arg0: i32) -> (i32, i32) {
    %c0_i32 = arith.constant 0 : i32
    %c0_i32_0 = arith.constant 0 : i32
    %c0_i32_1 = arith.constant 0 : i32
    return %c0_i32, %c0_i32_0 : i32, i32
  }
  func.func @transform_2(%arg0: i32) -> (i32, i32) {
    %c0_i32 = arith.constant 0 : i32
    %c0_i32_0 = arith.constant 0 : i32
    %c0_i32_1 = arith.constant 0 : i32
    return %c0_i32, %c0_i32_0 : i32, i32
  }
  func.func @transform_3(%arg0: i32) -> (i32, i32) {
    %c0_i32 = arith.constant 0 : i32
    %c0_i32_0 = arith.constant 0 : i32
    return %arg0, %c0_i32 : i32, i32
  }
}

module attributes {stable_mosaic.version = 11 : i64} {
  func.func @_fc_fused_kernel(%arg0: i32, %arg1: memref<16x256xbf16, #tpu.memory_space<vmem>>, %arg2: memref<256x512xbf16, #tpu.memory_space<vmem>>, %arg3: memref<1x512xf32, #tpu.memory_space<vmem>>, %arg4: memref<512x128xbf16, #tpu.memory_space<vmem>>, %arg5: memref<1x128xf32, #tpu.memory_space<vmem>>, %arg6: memref<16x128xf32, #tpu.memory_space<vmem>>) attributes {dimension_semantics = [#tpu.dimension_semantics<parallel>], iteration_bounds = array<i64: 1>, scalar_prefetch = 0 : i64, scratch_operands = 0 : i64, tpu.core_type = #tpu.core_type<tc>, window_params = [{transform_indices = @transform_0, window_bounds = array<i64: 16, 256>}, {pipeline_mode = #tpu.pipeline_mode<synchronous>, transform_indices = @transform_1, window_bounds = array<i64: 256, 512>}, {pipeline_mode = #tpu.pipeline_mode<synchronous>, transform_indices = @transform_2, window_bounds = array<i64: 1, 512>}, {pipeline_mode = #tpu.pipeline_mode<synchronous>, transform_indices = @transform_3, window_bounds = array<i64: 512, 128>}, {pipeline_mode = #tpu.pipeline_mode<synchronous>, transform_indices = @transform_4, window_bounds = array<i64: 1, 128>}, {transform_indices = @transform_5, window_bounds = array<i64: 16, 128>}]} {
    %c0 = arith.constant 0 : index
    %c0_0 = arith.constant 0 : index
    %0 = vector.load %arg1[%c0, %c0_0] : memref<16x256xbf16, #tpu.memory_space<vmem>>, vector<16x256xbf16>
    %c0_1 = arith.constant 0 : index
    %c0_2 = arith.constant 0 : index
    %1 = vector.load %arg2[%c0_1, %c0_2] : memref<256x512xbf16, #tpu.memory_space<vmem>>, vector<256x512xbf16>
    %cst = arith.constant dense<0.000000e+00> : vector<16x512xf32>
    %2 = tpu.matmul %0, %1, %cst {dimension_numbers = #tpu.dot_dimension_numbers<[1], [0], [0], [1], [0, 0, 1, 1], [], []>} : vector<16x256xbf16>, vector<256x512xbf16>, vector<16x512xf32> -> vector<16x512xf32>
    %c0_3 = arith.constant 0 : index
    %c0_4 = arith.constant 0 : index
    %3 = vector.load %arg3[%c0_3, %c0_4] : memref<1x512xf32, #tpu.memory_space<vmem>>, vector<1x512xf32>
    %4 = vector.broadcast %3 : vector<1x512xf32> to vector<16x512xf32>
    %5 = arith.addf %2, %4 : vector<16x512xf32>
    %cst_5 = arith.constant 0.000000e+00 : f32
    %6 = vector.broadcast %cst_5 : f32 to vector<16x512xf32>
    %7 = arith.maximumf %5, %6 : vector<16x512xf32>
    %8 = arith.truncf %7 : vector<16x512xf32> to vector<16x512xbf16>
    %c0_6 = arith.constant 0 : index
    %c0_7 = arith.constant 0 : index
    %9 = vector.load %arg4[%c0_6, %c0_7] : memref<512x128xbf16, #tpu.memory_space<vmem>>, vector<512x128xbf16>
    %cst_8 = arith.constant dense<0.000000e+00> : vector<16x128xf32>
    %10 = tpu.matmul %8, %9, %cst_8 {dimension_numbers = #tpu.dot_dimension_numbers<[1], [0], [0], [1], [0, 0, 1, 1], [], []>} : vector<16x512xbf16>, vector<512x128xbf16>, vector<16x128xf32> -> vector<16x128xf32>
    %c0_9 = arith.constant 0 : index
    %c0_10 = arith.constant 0 : index
    %11 = vector.load %arg5[%c0_9, %c0_10] : memref<1x128xf32, #tpu.memory_space<vmem>>, vector<1x128xf32>
    %12 = vector.broadcast %11 : vector<1x128xf32> to vector<16x128xf32>
    %13 = arith.addf %10, %12 : vector<16x128xf32>
    %c0_11 = arith.constant 0 : index
    %c0_12 = arith.constant 0 : index
    %14 = vector.load %arg6[%c0_11, %c0_12] : memref<16x128xf32, #tpu.memory_space<vmem>>, vector<16x128xf32>
    tpu.vector_store %arg6[%c0_11, %c0_12], %13 {strides = array<i32>} : memref<16x128xf32, #tpu.memory_space<vmem>>, vector<16x128xf32>,
    return
  }
  func.func @transform_0(%arg0: i32) -> (i32, i32) {
    %c0_i32 = arith.constant 0 : i32
    %c0_i32_0 = arith.constant 0 : i32
    return %arg0, %c0_i32 : i32, i32
  }
  func.func @transform_1(%arg0: i32) -> (i32, i32) {
    %c0_i32 = arith.constant 0 : i32
    %c0_i32_0 = arith.constant 0 : i32
    %c0_i32_1 = arith.constant 0 : i32
    return %c0_i32, %c0_i32_0 : i32, i32
  }
  func.func @transform_2(%arg0: i32) -> (i32, i32) {
    %c0_i32 = arith.constant 0 : i32
    %c0_i32_0 = arith.constant 0 : i32
    %c0_i32_1 = arith.constant 0 : i32
    return %c0_i32, %c0_i32_0 : i32, i32
  }
  func.func @transform_3(%arg0: i32) -> (i32, i32) {
    %c0_i32 = arith.constant 0 : i32
    %c0_i32_0 = arith.constant 0 : i32
    %c0_i32_1 = arith.constant 0 : i32
    return %c0_i32, %c0_i32_0 : i32, i32
  }
  func.func @transform_4(%arg0: i32) -> (i32, i32) {
    %c0_i32 = arith.constant 0 : i32
    %c0_i32_0 = arith.constant 0 : i32
    %c0_i32_1 = arith.constant 0 : i32
    return %c0_i32, %c0_i32_0 : i32, i32
  }
  func.func @transform_5(%arg0: i32) -> (i32, i32) {
    %c0_i32 = arith.constant 0 : i32
    %c0_i32_0 = arith.constant 0 : i32
    return %arg0, %c0_i32 : i32, i32
  }
}

</mosaic_0001>

<bundles_post_ra>
// kernel: dqn_forward.4
= control target key start
LH: loop header
LB: loop body
LE: loop exit
PB: predicated region body
PF: predicated region fallthrough
CT: control target
= control target key end

     0   :  { %s1136_s1 = inlined_call_operand.vmem [shape: bf16[256,128], index: 1, kind: input, shape index: {}]   ;;  %s1137_s2 = inlined_call_operand.vmem [shape: f32[1,128], index: 2, kind: input, shape index: {}]   ;;  %s1138_s0 = inlined_call_operand.vmem [shape: bf16[208,256], index: 0, kind: input, shape index: {}]   ;;  %s1139_s3 = inlined_call_operand.vmem [shape: bf16[208,128], index: 3, kind: output, shape index: {}]  }
   0x1   :  { %v733_v0 = vld [vmem:[%s1136_s1 + $0x38] sm:$0xff]  ;;  %v732_v2 = vld [vmem:[%s1136_s1 + $0x30] sm:$0xff]  ;;  %v731_v4 = vld [vmem:[%s1136_s1 + $0x28] sm:$0xff] }
   0x2   :  { %v741_v1 = vld [vmem:[%s1136_s1 + $0x78] sm:$0xff]  ;;  %302 = vmatpush.bf16.msra.mxu0 %v733_v0  ;;  %819 = vmatpush.bf16.msra.mxu2 %v733_v0  ;;  %v740_v3 = vld [vmem:[%s1136_s1 + $0x70] sm:$0xff]  ;;  %v739_v5 = vld [vmem:[%s1136_s1 + $0x68] sm:$0xff] }
   0x3   :  { %376 = vmatpush.bf16.msra.mxu1 %v741_v1  ;;  %827 = vmatpush.bf16.msra.mxu3 %v741_v1  ;;  %v730_v6 = vld [vmem:[%s1136_s1 + $0x20] sm:$0xff]  ;;  %v729_v8 = vld [vmem:[%s1136_s1 + $0x18] sm:$0xff]  ;;  %v728_v10 = vld [vmem:[%s1136_s1 + $0x10] sm:$0xff] }
   0x4   :  { %v738_v7 = vld [vmem:[%s1136_s1 + $0x60] sm:$0xff]  ;;  %v737_v9 = vld [vmem:[%s1136_s1 + $0x58] sm:$0xff]  ;;  %v736_v11 = vld [vmem:[%s1136_s1 + $0x50] sm:$0xff] }
   0x5   :  { %v727_v12 = vld [vmem:[%s1136_s1 + $0x8] sm:$0xff]  ;;  %v726_v14 = vld [vmem:[%s1136_s1] sm:$0xff]  ;;  %v714_v22 = vld [vmem:[%s1138_s0 + $0x74] sm:$0xf] }
   0x6   :  { %303 = vmatpush.bf16.msra.mxu0 %v732_v2  ;;  %820 = vmatpush.bf16.msra.mxu2 %v732_v2  ;;  %v735_v13 = vld [vmem:[%s1136_s1 + $0x48] sm:$0xff]  ;;  %v734_v15 = vld [vmem:[%s1136_s1 + $0x40] sm:$0xff]  ;;  %v592_v23 = vld [vmem:[%s1138_s0 + $0x78] sm:$0xf0] }
   0x7   :  { %377 = vmatpush.bf16.msra.mxu1 %v740_v3  ;;  %828 = vmatpush.bf16.msra.mxu3 %v740_v3  ;;  %v534_v16 = vld [vmem:[%s1138_s0] sm:$0xf]  ;;  %v701_v17 = vld [vmem:[%s1138_s0 + $0x4] sm:$0xf0]  ;;  %v700_v20 = vld [vmem:[%s1138_s0 + $0x4] sm:$0xf]  ;;  %v595_v27 = vor.u32 %v714_v22, %v592_v23 }
   0x8   :  { %v582_v18 = vld [vmem:[%s1138_s0 + $0x60] sm:$0xf]  ;;  %v713_v19 = vld [vmem:[%s1138_s0 + $0x64] sm:$0xf0]  ;;  %v536_v21 = vld [vmem:[%s1138_s0 + $0x8] sm:$0xf0]  ;;  %v535_v24 = vor.u32 %v701_v17, %v534_v16 }
   0x9   :  { %v583_v25 = vor.u32 %v713_v19, %v582_v18  ;;  %v539_v26 = vor.u32 %v700_v20, %v536_v21  ;;  %v542_v28 = vld [vmem:[%s1138_s0 + $0x10] sm:$0xf]  ;;  %v703_v29 = vld [vmem:[%s1138_s0 + $0x14] sm:$0xf0]  ;;  %v702_v32 = vld [vmem:[%s1138_s0 + $0x14] sm:$0xf] }
   0xa   :  { %304 = vmatpush.bf16.msra.mxu0 %v731_v4  ;;  %821 = vmatpush.bf16.msra.mxu2 %v731_v4  ;;  %v590_v30 = vld [vmem:[%s1138_s0 + $0x70] sm:$0xf]  ;;  %v715_v31 = vld [vmem:[%s1138_s0 + $0x74] sm:$0xf0]  ;;  %v544_v33 = vld [vmem:[%s1138_s0 + $0x18] sm:$0xf0]  ;;  %v543_v36 = vor.u32 %v703_v29, %v542_v28 }
   0xb   :  { %378 = vmatpush.bf16.msra.mxu1 %v739_v5  ;;  %829 = vmatpush.bf16.msra.mxu3 %v739_v5  ;;  %v716_v34 = vld [vmem:[%s1138_s0 + $0x84] sm:$0xf]  ;;  %v600_v35 = vld [vmem:[%s1138_s0 + $0x88] sm:$0xf0]  ;;  %v591_v37 = vor.u32 %v715_v31, %v590_v30  ;;  %v547_v38 = vor.u32 %v702_v32, %v544_v33  ;;  %v550_v40 = vld [vmem:[%s1138_s0 + $0x20] sm:$0xf] }
   0xc   :  { %v603_v39 = vor.u32 %v716_v34, %v600_v35  ;;  %v705_v41 = vld [vmem:[%s1138_s0 + $0x24] sm:$0xf0]  ;;  %v598_v42 = vld [vmem:[%s1138_s0 + $0x80] sm:$0xf]  ;;  %v704_v44 = vld [vmem:[%s1138_s0 + $0x24] sm:$0xf] }
   0xd   :  { %v717_v43 = vld [vmem:[%s1138_s0 + $0x84] sm:$0xf0]  ;;  %v552_v45 = vld [vmem:[%s1138_s0 + $0x28] sm:$0xf0]  ;;  %v718_v46 = vld [vmem:[%s1138_s0 + $0x94] sm:$0xf]  ;;  %v551_v48 = vor.u32 %v705_v41, %v550_v40 }
   0xe   :  { %305 = vmatpush.bf16.msra.mxu0 %v730_v6  ;;  %822 = vmatpush.bf16.msra.mxu2 %v730_v6  ;;  %v608_v47 = vld [vmem:[%s1138_s0 + $0x98] sm:$0xf0]  ;;  %v599_v49 = vor.u32 %v717_v43, %v598_v42  ;;  %v555_v50 = vor.u32 %v704_v44, %v552_v45  ;;  %v558_v52 = vld [vmem:[%s1138_s0 + $0x30] sm:$0xf]  ;;  %v707_v53 = vld [vmem:[%s1138_s0 + $0x34] sm:$0xf0] }
   0xf   :  { %379 = vmatpush.bf16.msra.mxu1 %v738_v7  ;;  %830 = vmatpush.bf16.msra.mxu3 %v738_v7  ;;  %v611_v51 = vor.u32 %v718_v46, %v608_v47  ;;  %v606_v54 = vld [vmem:[%s1138_s0 + $0x90] sm:$0xf]  ;;  %v719_v55 = vld [vmem:[%s1138_s0 + $0x94] sm:$0xf0]  ;;  %v706_v56 = vld [vmem:[%s1138_s0 + $0x34] sm:$0xf]  ;;  %v559_v60 = vor.u32 %v707_v53, %v558_v52 }
  0x10   :  { %v560_v57 = vld [vmem:[%s1138_s0 + $0x38] sm:$0xf0]  ;;  %v720_v58 = vld [vmem:[%s1138_s0 + $0xa4] sm:$0xf]  ;;  %v616_v59 = vld [vmem:[%s1138_s0 + $0xa8] sm:$0xf0]  ;;  %v607_v61 = vor.u32 %v719_v55, %v606_v54 }
  0x11   :  { %v563_v62 = vor.u32 %v706_v56, %v560_v57  ;;  %v619_v63 = vor.u32 %v720_v58, %v616_v59  ;;  %v566_v0 = vld [vmem:[%s1138_s0 + $0x40] sm:$0xf]  ;;  %v709_v1 = vld [vmem:[%s1138_s0 + $0x44] sm:$0xf0]  ;;  %v708_v4 = vld [vmem:[%s1138_s0 + $0x44] sm:$0xf] }
  0x12   :  { %306 = vmatpush.bf16.msra.mxu0 %v729_v8  ;;  %823 = vmatpush.bf16.msra.mxu2 %v729_v8  ;;  %v614_v2 = vld [vmem:[%s1138_s0 + $0xa0] sm:$0xf]  ;;  %v721_v3 = vld [vmem:[%s1138_s0 + $0xa4] sm:$0xf0]  ;;  %v568_v5 = vld [vmem:[%s1138_s0 + $0x48] sm:$0xf0]  ;;  %v567_v8 = vor.u32 %v709_v1, %v566_v0 }
  0x13   :  { %380 = vmatpush.bf16.msra.mxu1 %v737_v9  ;;  %831 = vmatpush.bf16.msra.mxu3 %v737_v9  ;;  %v722_v6 = vld [vmem:[%s1138_s0 + $0xb4] sm:$0xf]  ;;  %v624_v7 = vld [vmem:[%s1138_s0 + $0xb8] sm:$0xf0]  ;;  %v615_v9 = vor.u32 %v721_v3, %v614_v2  ;;  %v724_v18 = vld [vmem:[%s1138_s0 + $0xc4] sm:$0xf] }
  0x14   :  { %v710_v16 = vld [vmem:[%s1138_s0 + $0x54] sm:$0xf]  ;;  %v576_v17 = vld [vmem:[%s1138_s0 + $0x58] sm:$0xf0]  ;;  %v632_v19 = vld [vmem:[%s1138_s0 + $0xc8] sm:$0xf0] }
  0x15   :  { %v579_v22 = vor.u32 %v710_v16, %v576_v17  ;;  %v635_v23 = vor.u32 %v724_v18, %v632_v19  ;;  %v1063_v31 = vld [vmem:[%s1137_s2] ss:$0 sm:$0xff] }
  0x16   :  { %307 = vmatpush.bf16.msra.mxu0 %v728_v10  ;;  %824 = vmatpush.bf16.msra.mxu2 %v728_v10  ;;  %v571_v10 = vor.u32 %v708_v4, %v568_v5 }
  0x17   :  { %381 = vmatpush.bf16.msra.mxu1 %v736_v11  ;;  %832 = vmatpush.bf16.msra.mxu3 %v736_v11  ;;  %v627_v11 = vor.u32 %v722_v6, %v624_v7 }
  0x1a   :  { %308 = vmatpush.bf16.msra.mxu0 %v727_v12  ;;  %825 = vmatpush.bf16.msra.mxu2 %v727_v12  ;;  %v574_v12 = vld [vmem:[%s1138_s0 + $0x50] sm:$0xf] }
  0x1b   :  { %382 = vmatpush.bf16.msra.mxu1 %v735_v13  ;;  %833 = vmatpush.bf16.msra.mxu3 %v735_v13  ;;  %v711_v13 = vld [vmem:[%s1138_s0 + $0x54] sm:$0xf0] }
  0x1c   :  { %v575_v20 = vor.u32 %v711_v13, %v574_v12 }
  0x1e   :  { %309 = vmatpush.bf16.msra.mxu0 %v726_v14  ;;  %826 = vmatpush.bf16.msra.mxu2 %v726_v14  ;;  %v622_v14 = vld [vmem:[%s1138_s0 + $0xb0] sm:$0xf] }
  0x1f   :  { %383 = vmatpush.bf16.msra.mxu1 %v734_v15  ;;  %834 = vmatpush.bf16.msra.mxu3 %v734_v15  ;;  %v723_v15 = vld [vmem:[%s1138_s0 + $0xb4] sm:$0xf0] }
  0x20   :  { %v623_v21 = vor.u32 %v723_v15, %v622_v14 }
  0x21   :  { %310 = vmatmul.bf16.vlgmr.msra.gmra.mxu0 %v535_v24  ;;  %340 = vmatmul.bf16.vlgmr.msra.gmra.mxu2 %v583_v25  ;;  %v630_v24 = vld [vmem:[%s1138_s0 + $0xc0] sm:$0xf]  ;;  %v725_v25 = vld [vmem:[%s1138_s0 + $0xc4] sm:$0xf0] }
  0x22   :  { %384 = vmatmul.bf16.vlgmr.msra.gmra.mxu1 %v539_v26  ;;  %419 = vmatmul.bf16.vlgmr.msra.gmra.mxu3 %v595_v27  ;;  %v712_v26 = vld [vmem:[%s1138_s0 + $0x64] sm:$0xf]  ;;  %v584_v27 = vld [vmem:[%s1138_s0 + $0x68] sm:$0xf0]  ;;  %v631_v28 = vor.u32 %v725_v25, %v630_v24 }
  0x23   :  { %v587_v29 = vor.u32 %v712_v26, %v584_v27 }
  0x31   :  { %315 = vmatmul.bf16.gmra.mxu0 %v543_v36  ;;  %345 = vmatmul.bf16.gmra.mxu2 %v591_v37 }
  0x32   :  { %389 = vmatmul.bf16.gmra.mxu1 %v547_v38  ;;  %424 = vmatmul.bf16.gmra.mxu3 %v603_v39 }
  0x41   :  { %320 = vmatmul.bf16.gmra.mxu0 %v551_v48  ;;  %350 = vmatmul.bf16.gmra.mxu2 %v599_v49 }
  0x42   :  { %394 = vmatmul.bf16.gmra.mxu1 %v555_v50  ;;  %429 = vmatmul.bf16.gmra.mxu3 %v611_v51 }
  0x51   :  { %325 = vmatmul.bf16.gmra.mxu0 %v559_v60  ;;  %355 = vmatmul.bf16.gmra.mxu2 %v607_v61 }
  0x52   :  { %399 = vmatmul.bf16.gmra.mxu1 %v563_v62  ;;  %434 = vmatmul.bf16.gmra.mxu3 %v619_v63 }
  0x61   :  { %330 = vmatmul.bf16.gmra.mxu0 %v567_v8  ;;  %360 = vmatmul.bf16.gmra.mxu2 %v615_v9 }
  0x62   :  { %404 = vmatmul.bf16.gmra.mxu1 %v571_v10  ;;  %439 = vmatmul.bf16.gmra.mxu3 %v627_v11 }
  0x71   :  { %335 = vmatmul.bf16.gmra.mxu0 %v575_v20  ;;  %365 = vmatmul.bf16.gmra.mxu2 %v623_v21 }
  0x72   :  { %409 = vmatmul.bf16.gmra.mxu1 %v579_v22  ;;  %444 = vmatmul.bf16.gmra.mxu3 %v635_v23 }
  0x81   :  { %370 = vmatmul.bf16.gmra.mxu2 %v631_v28 }
  0x82   :  { %414 = vmatmul.bf16.gmra.mxu1 %v587_v29 }
  0x9e   :  { %v311_v30 = vpop.f32.mrf.mxu0 }
  0x9f   :  { %v385_v32 = vpop.f32.mrf.mxu1  ;;  %v312_v33 = vadd.f32 %v1063_v31, %v311_v30 }
  0xa1   :  { %v386_v37 = vadd.f32 %v385_v32, %v312_v33 }
  0xa3   :  { %v450_v41 = vmax.f32 %v386_v37, 0.0 }
  0xa4   :  { %v1066_v34 = vpop.f32.mrf.mxu2 }
  0xa5   :  { %v420_v35 = vpop.f32.mrf.mxu3 }
  0xa6   :  { %v313_v36 = vpop.f32.mrf.mxu0 }
  0xa7   :  { %v314_v38 = vadd.f32 %v1063_v31, %v313_v36  ;;  %v387_v39 = vpop.f32.mrf.mxu1 }
  0xa9   :  { %v388_v40 = vadd.f32 %v387_v39, %v314_v38 }
  0xab   :  { %v451_v42 = vmax.f32 %v388_v40, 0.0 }
  0xac   :  { %v1069_v43 = vpop.f32.mrf.mxu2 }
  0xad   :  { %v745_v44 = vpack.c.bf16 %v451_v42, %v450_v41  ;;  %v422_v45 = vpop.f32.mrf.mxu3 }
  0xae   :  { %v316_v46 = vpop.f32.mrf.mxu0 }
  0xaf   :  { %746 = vst [vmem:[%s1139_s3] sm:$0xff] %v745_v44   ;;  %v390_v47 = vpop.f32.mrf.mxu1  ;;  %v317_v48 = vadd.f32 %v1063_v31, %v316_v46 }
  0xb1   :  { %v391_v52 = vadd.f32 %v390_v47, %v317_v48 }
  0xb3   :  { %v452_v57 = vmax.f32 %v391_v52, 0.0 }
  0xb4   :  { %v346_v49 = vpop.f32.mrf.mxu2 }
  0xb5   :  { %v425_v50 = vpop.f32.mrf.mxu3  ;;  %v347_v55 = vadd.f32 %v1063_v31, %v346_v49 }
  0xb6   :  { %v318_v51 = vpop.f32.mrf.mxu0 }
  0xb7   :  { %v319_v53 = vadd.f32 %v1063_v31, %v318_v51  ;;  %v392_v54 = vpop.f32.mrf.mxu1  ;;  %v421_v60 = vadd.f32 %v420_v35, %v347_v55 }
  0xb9   :  { %v393_v56 = vadd.f32 %v392_v54, %v319_v53  ;;  %v464_v3 = vmax.f32 %v421_v60, 0.0 }
  0xbb   :  { %v453_v58 = vmax.f32 %v393_v56, 0.0 }
  0xbc   :  { %v348_v59 = vpop.f32.mrf.mxu2 }
  0xbd   :  { %v750_v61 = vpack.c.bf16 %v453_v58, %v452_v57  ;;  %v349_v62 = vadd.f32 %v1063_v31, %v348_v59  ;;  %v427_v0 = vpop.f32.mrf.mxu3 }
  0xbe   :  { %v321_v63 = vpop.f32.mrf.mxu0 }
  0xbf   :  { %807 = vst [vmem:[%s1139_s3 + $0x8] sm:$0xff] %v750_v61   ;;  %v423_v1 = vadd.f32 %v422_v45, %v349_v62  ;;  %v395_v2 = vpop.f32.mrf.mxu1  ;;  %v322_v6 = vadd.f32 %v1063_v31, %v321_v63 }
  0xc1   :  { %v465_v4 = vmax.f32 %v423_v1, 0.0  ;;  %v396_v9 = vadd.f32 %v395_v2, %v322_v6 }
  0xc3   :  { %v780_v5 = vpack.c.bf16 %v465_v4, %v464_v3  ;;  %v454_v15 = vmax.f32 %v396_v9, 0.0 }
  0xc4   :  { %v351_v7 = vpop.f32.mrf.mxu2 }
  0xc5   :  { %813 = vst [vmem:[%s1139_s3 + $0x38] sm:$0xff] %v780_v5   ;;  %v430_v12 = vpop.f32.mrf.mxu3  ;;  %v352_v13 = vadd.f32 %v1063_v31, %v351_v7 }
  0xc6   :  { %v323_v8 = vpop.f32.mrf.mxu0 }
  0xc7   :  { %v324_v10 = vadd.f32 %v1063_v31, %v323_v8  ;;  %v397_v11 = vpop.f32.mrf.mxu1  ;;  %v426_v18 = vadd.f32 %v425_v50, %v352_v13 }
  0xc9   :  { %v398_v14 = vadd.f32 %v397_v11, %v324_v10  ;;  %v466_v24 = vmax.f32 %v426_v18, 0.0 }
  0xcb   :  { %v455_v16 = vmax.f32 %v398_v14, 0.0 }
  0xcc   :  { %v353_v17 = vpop.f32.mrf.mxu2 }
  0xcd   :  { %v755_v19 = vpack.c.bf16 %v455_v16, %v454_v15  ;;  %v354_v20 = vadd.f32 %v1063_v31, %v353_v17  ;;  %v432_v26 = vpop.f32.mrf.mxu3 }
  0xce   :  { %v326_v21 = vpop.f32.mrf.mxu0 }
  0xcf   :  { %808 = vst [vmem:[%s1139_s3 + $0x10] sm:$0xff] %v755_v19   ;;  %v428_v22 = vadd.f32 %v427_v0, %v354_v20  ;;  %v400_v23 = vpop.f32.mrf.mxu1  ;;  %v327_v28 = vadd.f32 %v1063_v31, %v326_v21 }
  0xd1   :  { %v467_v25 = vmax.f32 %v428_v22, 0.0  ;;  %v401_v32 = vadd.f32 %v400_v23, %v327_v28 }
  0xd3   :  { %v785_v27 = vpack.c.bf16 %v467_v25, %v466_v24  ;;  %v456_v38 = vmax.f32 %v401_v32, 0.0 }
  0xd4   :  { %v356_v29 = vpop.f32.mrf.mxu2 }
  0xd5   :  { %814 = vst [vmem:[%s1139_s3 + $0x40] sm:$0xff] %v785_v27   ;;  %v357_v36 = vadd.f32 %v1063_v31, %v356_v29  ;;  %v435_v41 = vpop.f32.mrf.mxu3 }
  0xd6   :  { %v328_v30 = vpop.f32.mrf.mxu0 }
  0xd7   :  { %v329_v33 = vadd.f32 %v1063_v31, %v328_v30  ;;  %v402_v35 = vpop.f32.mrf.mxu1  ;;  %v431_v42 = vadd.f32 %v430_v12, %v357_v36  ;;  %v342_v30 = vadd.f32 %v1063_v31, %v1066_v34 }
  0xd9   :  { %v403_v37 = vadd.f32 %v402_v35, %v329_v33  ;;  %v468_v49 = vmax.f32 %v431_v42, 0.0  ;;  %v344_v35 = vadd.f32 %v1063_v31, %v1069_v43 }
  0xdb   :  { %v457_v39 = vmax.f32 %v403_v37, 0.0 }
  0xdc   :  { %v358_v40 = vpop.f32.mrf.mxu2 }
  0xdd   :  { %v760_v44 = vpack.c.bf16 %v457_v39, %v456_v38  ;;  %v359_v45 = vadd.f32 %v1063_v31, %v358_v40  ;;  %v437_v55 = vpop.f32.mrf.mxu3 }
  0xde   :  { %v331_v46 = vpop.f32.mrf.mxu0 }
  0xdf   :  { %809 = vst [vmem:[%s1139_s3 + $0x18] sm:$0xff] %v760_v44   ;;  %v433_v47 = vadd.f32 %v432_v26, %v359_v45  ;;  %v405_v48 = vpop.f32.mrf.mxu1  ;;  %v332_v52 = vadd.f32 %v1063_v31, %v331_v46 }
  0xe1   :  { %v469_v50 = vmax.f32 %v433_v47, 0.0  ;;  %v406_v56 = vadd.f32 %v405_v48, %v332_v52 }
  0xe3   :  { %v790_v51 = vpack.c.bf16 %v469_v50, %v468_v49  ;;  %v458_v61 = vmax.f32 %v406_v56, 0.0 }
  0xe4   :  { %v361_v53 = vpop.f32.mrf.mxu2 }
  0xe5   :  { %815 = vst [vmem:[%s1139_s3 + $0x48] sm:$0xff] %v790_v51   ;;  %v362_v59 = vadd.f32 %v1063_v31, %v361_v53  ;;  %v440_v6 = vpop.f32.mrf.mxu3 }
  0xe6   :  { %v333_v54 = vpop.f32.mrf.mxu0 }
  0xe7   :  { %v334_v57 = vadd.f32 %v1063_v31, %v333_v54  ;;  %v407_v58 = vpop.f32.mrf.mxu1  ;;  %v436_v0 = vadd.f32 %v435_v41, %v362_v59 }
  0xe9   :  { %v408_v60 = vadd.f32 %v407_v58, %v334_v57  ;;  %v470_v7 = vmax.f32 %v436_v0, 0.0 }
  0xeb   :  { %v459_v62 = vmax.f32 %v408_v60, 0.0 }
  0xec   :  { %v363_v63 = vpop.f32.mrf.mxu2 }
  0xed   :  { %v765_v1 = vpack.c.bf16 %v459_v62, %v458_v61  ;;  %v364_v2 = vadd.f32 %v1063_v31, %v363_v63  ;;  %v442_v18 = vpop.f32.mrf.mxu3 }
  0xee   :  { %v336_v3 = vpop.f32.mrf.mxu0 }
  0xef   :  { %810 = vst [vmem:[%s1139_s3 + $0x20] sm:$0xff] %v765_v1   ;;  %v438_v4 = vadd.f32 %v437_v55, %v364_v2  ;;  %v410_v5 = vpop.f32.mrf.mxu1  ;;  %v337_v10 = vadd.f32 %v1063_v31, %v336_v3 }
  0xf1   :  { %v471_v8 = vmax.f32 %v438_v4, 0.0  ;;  %v411_v13 = vadd.f32 %v410_v5, %v337_v10 }
  0xf3   :  { %v795_v9 = vpack.c.bf16 %v471_v8, %v470_v7  ;;  %v460_v19 = vmax.f32 %v411_v13, 0.0 }
  0xf4   :  { %v366_v11 = vpop.f32.mrf.mxu2 }
  0xf5   :  { %816 = vst [vmem:[%s1139_s3 + $0x50] sm:$0xff] %v795_v9   ;;  %v367_v16 = vadd.f32 %v1063_v31, %v366_v11  ;;  %v445_v32 = vpop.f32.mrf.mxu3 }
  0xf6   :  { %v338_v12 = vpop.f32.mrf.mxu0 }
  0xf7   :  { %v339_v14 = vadd.f32 %v1063_v31, %v338_v12  ;;  %v412_v15 = vpop.f32.mrf.mxu1  ;;  %v441_v22 = vadd.f32 %v440_v6, %v367_v16 }
  0xf9   :  { %v413_v17 = vadd.f32 %v412_v15, %v339_v14  ;;  %v472_v27 = vmax.f32 %v441_v22, 0.0 }
  0xfb   :  { %v461_v20 = vmax.f32 %v413_v17, 0.0 }
  0xfc   :  { %v368_v21 = vpop.f32.mrf.mxu2 }
  0xfd   :  { %v770_v23 = vpack.c.bf16 %v461_v20, %v460_v19  ;;  %v369_v24 = vadd.f32 %v1063_v31, %v368_v21  ;;  %v447_v46 = vpop.f32.mrf.mxu3 }
  0xff   :  { %811 = vst [vmem:[%s1139_s3 + $0x28] sm:$0xff] %v770_v23   ;;  %v443_v25 = vadd.f32 %v442_v18, %v369_v24  ;;  %v415_v26 = vpop.f32.mrf.mxu1 }
 0x100   :  { %v416_v36 = vadd.f32 %v415_v26, %v342_v30 }
 0x101   :  { %v473_v28 = vmax.f32 %v443_v25, 0.0 }
 0x102   :  { %v462_v40 = vmax.f32 %v416_v36, 0.0 }
 0x103   :  { %v800_v29 = vpack.c.bf16 %v473_v28, %v472_v27 }
 0x104   :  { %v371_v33 = vpop.f32.mrf.mxu2 }
 0x105   :  { %817 = vst [vmem:[%s1139_s3 + $0x58] sm:$0xff] %v800_v29   ;;  %v372_v39 = vadd.f32 %v1063_v31, %v371_v33 }
 0x107   :  { %v417_v37 = vpop.f32.mrf.mxu1  ;;  %v446_v45 = vadd.f32 %v445_v32, %v372_v39 }
 0x108   :  { %v418_v38 = vadd.f32 %v417_v37, %v344_v35 }
 0x109   :  { %v474_v48 = vmax.f32 %v446_v45, 0.0 }
 0x10a   :  { %v463_v41 = vmax.f32 %v418_v38, 0.0 }
 0x10c   :  { %v775_v42 = vpack.c.bf16 %v463_v41, %v462_v40  ;;  %v373_v44 = vpop.f32.mrf.mxu2 }
 0x10d   :  { %v374_v34 = vadd.f32 %v1063_v31, %v373_v44 }
 0x10e   :  { %812 = vst [vmem:[%s1139_s3 + $0x30] sm:$0xff] %v775_v42  }
 0x10f   :  { %v448_v47 = vadd.f32 %v447_v46, %v374_v34 }
 0x111   :  { %v475_v43 = vmax.f32 %v448_v47, 0.0 }
 0x113   :  { %v805_v49 = vpack.c.bf16 %v475_v43, %v474_v48 }
 0x115   :  { %818 = vst [vmem:[%s1139_s3 + $0x60] sm:$0xff] %v805_v49  }

// kernel: dqn_forward.5
= control target key start
LH: loop header
LB: loop body
LE: loop exit
PB: predicated region body
PF: predicated region fallthrough
CT: control target
= control target key end

     0   :  { %s799_s1 = inlined_call_operand.vmem [shape: bf16[512,128], index: 1, kind: input, shape index: {}]   ;;  %s800_s2 = inlined_call_operand.vmem [shape: f32[1,128], index: 2, kind: input, shape index: {}]   ;;  %s801_s0 = inlined_call_operand.vmem [shape: bf16[32,512], index: 0, kind: input, shape index: {}]   ;;  %s802_s3 = inlined_call_operand.vmem [shape: bf16[32,128], index: 3, kind: output, shape index: {}]  }
   0x1   :  { %v589_v0 = vld [vmem:[%s799_s1 + $0x38] sm:$0xff]  ;;  %v588_v4 = vld [vmem:[%s799_s1 + $0x30] sm:$0xff]  ;;  %v587_v8 = vld [vmem:[%s799_s1 + $0x28] sm:$0xff] }
   0x2   :  { %v597_v1 = vld [vmem:[%s799_s1 + $0x78] sm:$0xff]  ;;  %322 = vmatpush.bf16.msra.mxu0 %v589_v0  ;;  %v596_v5 = vld [vmem:[%s799_s1 + $0x70] sm:$0xff]  ;;  %v595_v9 = vld [vmem:[%s799_s1 + $0x68] sm:$0xff] }
   0x3   :  { %v605_v2 = vld [vmem:[%s799_s1 + $0xb8] sm:$0xff]  ;;  %341 = vmatpush.bf16.msra.mxu1 %v597_v1  ;;  %v604_v6 = vld [vmem:[%s799_s1 + $0xb0] sm:$0xff]  ;;  %v603_v10 = vld [vmem:[%s799_s1 + $0xa8] sm:$0xff] }
   0x4   :  { %v613_v3 = vld [vmem:[%s799_s1 + $0xf8] sm:$0xff]  ;;  %360 = vmatpush.bf16.msra.mxu2 %v605_v2  ;;  %v612_v7 = vld [vmem:[%s799_s1 + $0xf0] sm:$0xff]  ;;  %v611_v11 = vld [vmem:[%s799_s1 + $0xe8] sm:$0xff] }
   0x5   :  { %379 = vmatpush.bf16.msra.mxu3 %v613_v3  ;;  %v586_v12 = vld [vmem:[%s799_s1 + $0x20] sm:$0xff]  ;;  %v585_v16 = vld [vmem:[%s799_s1 + $0x18] sm:$0xff]  ;;  %v584_v20 = vld [vmem:[%s799_s1 + $0x10] sm:$0xff] }
   0x6   :  { %323 = vmatpush.bf16.msra.mxu0 %v588_v4  ;;  %v594_v13 = vld [vmem:[%s799_s1 + $0x60] sm:$0xff]  ;;  %v593_v17 = vld [vmem:[%s799_s1 + $0x58] sm:$0xff]  ;;  %v592_v21 = vld [vmem:[%s799_s1 + $0x50] sm:$0xff] }
   0x7   :  { %342 = vmatpush.bf16.msra.mxu1 %v596_v5  ;;  %v602_v14 = vld [vmem:[%s799_s1 + $0xa0] sm:$0xff]  ;;  %v601_v18 = vld [vmem:[%s799_s1 + $0x98] sm:$0xff]  ;;  %v600_v22 = vld [vmem:[%s799_s1 + $0x90] sm:$0xff] }
   0x8   :  { %361 = vmatpush.bf16.msra.mxu2 %v604_v6  ;;  %v610_v15 = vld [vmem:[%s799_s1 + $0xe0] sm:$0xff]  ;;  %v609_v19 = vld [vmem:[%s799_s1 + $0xd8] sm:$0xff]  ;;  %v608_v23 = vld [vmem:[%s799_s1 + $0xd0] sm:$0xff] }
   0x9   :  { %380 = vmatpush.bf16.msra.mxu3 %v612_v7  ;;  %v583_v24 = vld [vmem:[%s799_s1 + $0x8] sm:$0xff]  ;;  %v582_v28 = vld [vmem:[%s799_s1] sm:$0xff]  ;;  %v576_v33 = vld [vmem:[%s801_s0 + $0xc] sm:$0xf0] }
   0xa   :  { %324 = vmatpush.bf16.msra.mxu0 %v587_v8  ;;  %v591_v25 = vld [vmem:[%s799_s1 + $0x48] sm:$0xff]  ;;  %v590_v29 = vld [vmem:[%s799_s1 + $0x40] sm:$0xff]  ;;  %v418_v35 = vld [vmem:[%s801_s0 + $0x10] sm:$0xf0] }
   0xb   :  { %343 = vmatpush.bf16.msra.mxu1 %v595_v9  ;;  %v599_v26 = vld [vmem:[%s799_s1 + $0x88] sm:$0xff]  ;;  %v598_v30 = vld [vmem:[%s799_s1 + $0x80] sm:$0xff]  ;;  %v577_v37 = vld [vmem:[%s801_s0 + $0x14] sm:$0xf0] }
   0xc   :  { %362 = vmatpush.bf16.msra.mxu2 %v603_v10  ;;  %v607_v27 = vld [vmem:[%s799_s1 + $0xc8] sm:$0xff]  ;;  %v606_v31 = vld [vmem:[%s799_s1 + $0xc0] sm:$0xff]  ;;  %v426_v39 = vld [vmem:[%s801_s0 + $0x18] sm:$0xf0] }
   0xd   :  { %381 = vmatpush.bf16.msra.mxu3 %v611_v11  ;;  %v416_v32 = vld [vmem:[%s801_s0] sm:$0xf]  ;;  %v574_v34 = vld [vmem:[%s801_s0 + $0x4] sm:$0xf]  ;;  %v424_v36 = vld [vmem:[%s801_s0 + $0x8] sm:$0xf] }
   0xe   :  { %325 = vmatpush.bf16.msra.mxu0 %v586_v12  ;;  %v575_v38 = vld [vmem:[%s801_s0 + $0xc] sm:$0xf]  ;;  %v417_v40 = vor.u32 %v576_v33, %v416_v32  ;;  %v421_v41 = vor.u32 %v574_v34, %v418_v35  ;;  %v425_v42 = vor.u32 %v577_v37, %v424_v36  ;;  %v432_v44 = vld [vmem:[%s801_s0 + $0x20] sm:$0xf]  ;;  %v580_v45 = vld [vmem:[%s801_s0 + $0x2c] sm:$0xf0] }
   0xf   :  { %344 = vmatpush.bf16.msra.mxu1 %v594_v13  ;;  %v429_v43 = vor.u32 %v575_v38, %v426_v39  ;;  %v578_v46 = vld [vmem:[%s801_s0 + $0x24] sm:$0xf]  ;;  %v434_v47 = vld [vmem:[%s801_s0 + $0x30] sm:$0xf0]  ;;  %v440_v48 = vld [vmem:[%s801_s0 + $0x28] sm:$0xf]  ;;  %v433_v52 = vor.u32 %v580_v45, %v432_v44 }
  0x10   :  { %363 = vmatpush.bf16.msra.mxu2 %v602_v14  ;;  %v581_v49 = vld [vmem:[%s801_s0 + $0x34] sm:$0xf0]  ;;  %v579_v50 = vld [vmem:[%s801_s0 + $0x2c] sm:$0xf]  ;;  %v442_v51 = vld [vmem:[%s801_s0 + $0x38] sm:$0xf0]  ;;  %v437_v53 = vor.u32 %v578_v46, %v434_v47 }
  0x11   :  { %382 = vmatpush.bf16.msra.mxu3 %v610_v15  ;;  %v441_v54 = vor.u32 %v581_v49, %v440_v48  ;;  %v445_v55 = vor.u32 %v579_v50, %v442_v51  ;;  %v625_v56 = vld [vmem:[%s800_s2] ss:$0 sm:$0xff] }
  0x12   :  { %326 = vmatpush.bf16.msra.mxu0 %v585_v16 }
  0x13   :  { %345 = vmatpush.bf16.msra.mxu1 %v593_v17 }
  0x14   :  { %364 = vmatpush.bf16.msra.mxu2 %v601_v18 }
  0x15   :  { %383 = vmatpush.bf16.msra.mxu3 %v609_v19 }
  0x16   :  { %327 = vmatpush.bf16.msra.mxu0 %v584_v20 }
  0x17   :  { %346 = vmatpush.bf16.msra.mxu1 %v592_v21 }
  0x18   :  { %365 = vmatpush.bf16.msra.mxu2 %v600_v22 }
  0x19   :  { %384 = vmatpush.bf16.msra.mxu3 %v608_v23 }
  0x1a   :  { %328 = vmatpush.bf16.msra.mxu0 %v583_v24 }
  0x1b   :  { %347 = vmatpush.bf16.msra.mxu1 %v591_v25 }
  0x1c   :  { %366 = vmatpush.bf16.msra.mxu2 %v599_v26 }
  0x1d   :  { %385 = vmatpush.bf16.msra.mxu3 %v607_v27 }
  0x1e   :  { %329 = vmatpush.bf16.msra.mxu0 %v582_v28 }
  0x1f   :  { %348 = vmatpush.bf16.msra.mxu1 %v590_v29 }
  0x20   :  { %367 = vmatpush.bf16.msra.mxu2 %v598_v30 }
  0x21   :  { %386 = vmatpush.bf16.msra.mxu3 %v606_v31  ;;  %330 = vmatmul.bf16.vlgmr.msra.gmra.mxu0 %v417_v40 }
  0x22   :  { %349 = vmatmul.bf16.vlgmr.msra.gmra.mxu1 %v421_v41 }
  0x23   :  { %368 = vmatmul.bf16.vlgmr.msra.gmra.mxu2 %v425_v42 }
  0x24   :  { %387 = vmatmul.bf16.vlgmr.msra.gmra.mxu3 %v429_v43 }
  0x31   :  { %335 = vmatmul.bf16.gmra.mxu0 %v433_v52 }
  0x32   :  { %354 = vmatmul.bf16.gmra.mxu1 %v437_v53 }
  0x33   :  { %373 = vmatmul.bf16.gmra.mxu2 %v441_v54 }
  0x34   :  { %392 = vmatmul.bf16.gmra.mxu3 %v445_v55 }
  0x9e   :  { %v331_v57 = vpop.f32.mrf.mxu0 }
  0x9f   :  { %v350_v58 = vpop.f32.mrf.mxu1  ;;  %v332_v59 = vadd.f32 %v625_v56, %v331_v57 }
  0xa1   :  { %v351_v62 = vadd.f32 %v350_v58, %v332_v59 }
  0xa6   :  { %v369_v60 = vpop.f32.mrf.mxu2  ;;  %v333_v63 = vpop.f32.mrf.mxu0 }
  0xa7   :  { %v388_v61 = vpop.f32.mrf.mxu3  ;;  %v352_v0 = vpop.f32.mrf.mxu1  ;;  %v334_v1 = vadd.f32 %v625_v56, %v333_v63  ;;  %v370_v2 = vadd.f32 %v369_v60, %v351_v62 }
  0xa9   :  { %v353_v3 = vadd.f32 %v352_v0, %v334_v1  ;;  %v389_v6 = vadd.f32 %v388_v61, %v370_v2 }
  0xab   :  { %v398_v11 = vmax.f32 %v389_v6, 0.0 }
  0xae   :  { %v371_v4 = vpop.f32.mrf.mxu2  ;;  %v336_v8 = vpop.f32.mrf.mxu0 }
  0xaf   :  { %v390_v5 = vpop.f32.mrf.mxu3  ;;  %v372_v7 = vadd.f32 %v371_v4, %v353_v3  ;;  %v355_v10 = vpop.f32.mrf.mxu1  ;;  %v337_v13 = vadd.f32 %v625_v56, %v336_v8 }
  0xb1   :  { %v391_v9 = vadd.f32 %v390_v5, %v372_v7  ;;  %v356_v17 = vadd.f32 %v355_v10, %v337_v13 }
  0xb3   :  { %v399_v12 = vmax.f32 %v391_v9, 0.0 }
  0xb5   :  { %v617_v14 = vpack.c.bf16 %v399_v12, %v398_v11 }
  0xb6   :  { %v374_v15 = vpop.f32.mrf.mxu2  ;;  %v338_v18 = vpop.f32.mrf.mxu0 }
  0xb7   :  { %v393_v16 = vpop.f32.mrf.mxu3  ;;  %618 = vst [vmem:[%s802_s3] sm:$0xff] %v617_v14   ;;  %v339_v19 = vadd.f32 %v625_v56, %v338_v18  ;;  %v375_v20 = vadd.f32 %v374_v15, %v356_v17  ;;  %v357_v21 = vpop.f32.mrf.mxu1 }
  0xb9   :  { %v358_v22 = vadd.f32 %v357_v21, %v339_v19  ;;  %v394_v24 = vadd.f32 %v393_v16, %v375_v20 }
  0xbb   :  { %v400_v28 = vmax.f32 %v394_v24, 0.0 }
  0xbe   :  { %v376_v23 = vpop.f32.mrf.mxu2 }
  0xbf   :  { %v377_v25 = vadd.f32 %v376_v23, %v358_v22  ;;  %v395_v26 = vpop.f32.mrf.mxu3 }
  0xc1   :  { %v396_v27 = vadd.f32 %v395_v26, %v377_v25 }
  0xc3   :  { %v401_v29 = vmax.f32 %v396_v27, 0.0 }
  0xc5   :  { %v622_v30 = vpack.c.bf16 %v401_v29, %v400_v28 }
  0xc7   :  { %624 = vst [vmem:[%s802_s3 + $0x8] sm:$0xff] %v622_v30  }

// kernel: dqn_forward.6
= control target key start
LH: loop header
LB: loop body
LE: loop exit
PB: predicated region body
PF: predicated region fallthrough
CT: control target
= control target key end

     0   :  { %s857_s1 = inlined_call_operand.vmem [shape: bf16[640,128], index: 1, kind: input, shape index: {}]   ;;  %s858_s2 = inlined_call_operand.vmem [shape: f32[1,128], index: 2, kind: input, shape index: {}]   ;;  %s859_s0 = inlined_call_operand.vmem [shape: bf16[16,640], index: 0, kind: input, shape index: {}]   ;;  %s860_s3 = inlined_call_operand.vmem [shape: bf16[16,128], index: 3, kind: output, shape index: {}]  }
   0x1   :  { %v642_v0 = vld [vmem:[%s857_s1 + $0x38] sm:$0xff]  ;;  %v641_v4 = vld [vmem:[%s857_s1 + $0x30] sm:$0xff]  ;;  %v640_v8 = vld [vmem:[%s857_s1 + $0x28] sm:$0xff] }
   0x2   :  { %v658_v1 = vld [vmem:[%s857_s1 + $0xb8] sm:$0xff]  ;;  %370 = vmatpush.bf16.msra.mxu0 %v642_v0  ;;  %v657_v5 = vld [vmem:[%s857_s1 + $0xb0] sm:$0xff]  ;;  %v656_v9 = vld [vmem:[%s857_s1 + $0xa8] sm:$0xff] }
   0x3   :  { %v666_v2 = vld [vmem:[%s857_s1 + $0xf8] sm:$0xff]  ;;  %398 = vmatpush.bf16.msra.mxu2 %v658_v1  ;;  %v665_v6 = vld [vmem:[%s857_s1 + $0xf0] sm:$0xff]  ;;  %v664_v10 = vld [vmem:[%s857_s1 + $0xe8] sm:$0xff] }
   0x4   :  { %v650_v3 = vld [vmem:[%s857_s1 + $0x78] sm:$0xff]  ;;  %412 = vmatpush.bf16.msra.mxu3 %v666_v2  ;;  %v649_v7 = vld [vmem:[%s857_s1 + $0x70] sm:$0xff]  ;;  %v648_v11 = vld [vmem:[%s857_s1 + $0x68] sm:$0xff] }
   0x5   :  { %384 = vmatpush.bf16.msra.mxu1 %v650_v3  ;;  %v639_v12 = vld [vmem:[%s857_s1 + $0x20] sm:$0xff]  ;;  %v638_v16 = vld [vmem:[%s857_s1 + $0x18] sm:$0xff]  ;;  %v637_v20 = vld [vmem:[%s857_s1 + $0x10] sm:$0xff] }
   0x6   :  { %371 = vmatpush.bf16.msra.mxu0 %v641_v4  ;;  %v655_v13 = vld [vmem:[%s857_s1 + $0xa0] sm:$0xff]  ;;  %v654_v17 = vld [vmem:[%s857_s1 + $0x98] sm:$0xff]  ;;  %v653_v21 = vld [vmem:[%s857_s1 + $0x90] sm:$0xff] }
   0x7   :  { %399 = vmatpush.bf16.msra.mxu2 %v657_v5  ;;  %v663_v14 = vld [vmem:[%s857_s1 + $0xe0] sm:$0xff]  ;;  %v662_v18 = vld [vmem:[%s857_s1 + $0xd8] sm:$0xff]  ;;  %v661_v22 = vld [vmem:[%s857_s1 + $0xd0] sm:$0xff] }
   0x8   :  { %413 = vmatpush.bf16.msra.mxu3 %v665_v6  ;;  %v647_v15 = vld [vmem:[%s857_s1 + $0x60] sm:$0xff]  ;;  %v646_v19 = vld [vmem:[%s857_s1 + $0x58] sm:$0xff]  ;;  %v645_v23 = vld [vmem:[%s857_s1 + $0x50] sm:$0xff] }
   0x9   :  { %385 = vmatpush.bf16.msra.mxu1 %v649_v7  ;;  %v636_v24 = vld [vmem:[%s857_s1 + $0x8] sm:$0xff]  ;;  %v635_v28 = vld [vmem:[%s857_s1] sm:$0xff]  ;;  %v674_v29 = vld [vmem:[%s857_s1 + $0x138] sm:$0xff] }
   0xa   :  { %372 = vmatpush.bf16.msra.mxu0 %v640_v8  ;;  %v652_v25 = vld [vmem:[%s857_s1 + $0x88] sm:$0xff]  ;;  %v651_v30 = vld [vmem:[%s857_s1 + $0x80] sm:$0xff]  ;;  %v633_v32 = vld [vmem:[%s859_s0 + $0x18] sm:$0xf0] }
   0xb   :  { %400 = vmatpush.bf16.msra.mxu2 %v656_v9  ;;  %v660_v26 = vld [vmem:[%s857_s1 + $0xc8] sm:$0xff]  ;;  %v452_v33 = vld [vmem:[%s859_s0] sm:$0xf]  ;;  %v632_v34 = vld [vmem:[%s859_s0 + $0x10] sm:$0xf0] }
   0xc   :  { %414 = vmatpush.bf16.msra.mxu3 %v664_v10  ;;  %v644_v27 = vld [vmem:[%s857_s1 + $0x48] sm:$0xff]  ;;  %v659_v35 = vld [vmem:[%s857_s1 + $0xc0] sm:$0xff]  ;;  %v454_v40 = vld [vmem:[%s859_s0 + $0x14] sm:$0xf0]  ;;  %v453_v42 = vor.u32 %v632_v34, %v452_v33 }
   0xd   :  { %386 = vmatpush.bf16.msra.mxu1 %v648_v11  ;;  %v460_v31 = vld [vmem:[%s859_s0 + $0x8] sm:$0xf]  ;;  %v631_v36 = vld [vmem:[%s859_s0 + $0xc] sm:$0xf]  ;;  %v462_v37 = vld [vmem:[%s859_s0 + $0x1c] sm:$0xf0] }
   0xe   :  { %373 = vmatpush.bf16.msra.mxu0 %v639_v12  ;;  %v643_v38 = vld [vmem:[%s857_s1 + $0x40] sm:$0xff]  ;;  %v461_v41 = vor.u32 %v633_v32, %v460_v31  ;;  %v465_v43 = vor.u32 %v631_v36, %v462_v37  ;;  %v673_v44 = vld [vmem:[%s857_s1 + $0x130] sm:$0xff]  ;;  %v672_v46 = vld [vmem:[%s857_s1 + $0x128] sm:$0xff] }
   0xf   :  { %401 = vmatpush.bf16.msra.mxu2 %v655_v13  ;;  %v630_v39 = vld [vmem:[%s859_s0 + $0x4] sm:$0xf]  ;;  %v670_v48 = vld [vmem:[%s857_s1 + $0x118] sm:$0xff]  ;;  %v669_v49 = vld [vmem:[%s857_s1 + $0x110] sm:$0xff] }
  0x10   :  { %415 = vmatpush.bf16.msra.mxu3 %v663_v14  ;;  %v457_v45 = vor.u32 %v630_v39, %v454_v40  ;;  %v671_v47 = vld [vmem:[%s857_s1 + $0x120] sm:$0xff]  ;;  %v668_v50 = vld [vmem:[%s857_s1 + $0x108] sm:$0xff]  ;;  %v468_v52 = vld [vmem:[%s859_s0 + $0x10] sm:$0xf] }
  0x11   :  { %387 = vmatpush.bf16.msra.mxu1 %v647_v15  ;;  %v667_v51 = vld [vmem:[%s857_s1 + $0x100] sm:$0xff] }
  0x12   :  { %374 = vmatpush.bf16.msra.mxu0 %v638_v16  ;;  %v634_v53 = vld [vmem:[%s859_s0 + $0x20] sm:$0xf0]  ;;  %v680_v57 = vld [vmem:[%s858_s2] ss:$0 sm:$0xff] }
  0x13   :  { %402 = vmatpush.bf16.msra.mxu2 %v654_v17  ;;  %v469_v54 = vor.u32 %v634_v53, %v468_v52 }
  0x14   :  { %416 = vmatpush.bf16.msra.mxu3 %v662_v18 }
  0x15   :  { %388 = vmatpush.bf16.msra.mxu1 %v646_v19 }
  0x16   :  { %375 = vmatpush.bf16.msra.mxu0 %v637_v20 }
  0x17   :  { %403 = vmatpush.bf16.msra.mxu2 %v653_v21 }
  0x18   :  { %417 = vmatpush.bf16.msra.mxu3 %v661_v22 }
  0x19   :  { %389 = vmatpush.bf16.msra.mxu1 %v645_v23 }
  0x1a   :  { %376 = vmatpush.bf16.msra.mxu0 %v636_v24 }
  0x1b   :  { %404 = vmatpush.bf16.msra.mxu2 %v652_v25 }
  0x1c   :  { %418 = vmatpush.bf16.msra.mxu3 %v660_v26 }
  0x1d   :  { %390 = vmatpush.bf16.msra.mxu1 %v644_v27 }
  0x1e   :  { %377 = vmatpush.bf16.msra.mxu0 %v635_v28 }
  0x1f   :  { %405 = vmatpush.bf16.msra.mxu2 %v651_v30 }
  0x20   :  { %419 = vmatpush.bf16.msra.mxu3 %v659_v35 }
  0x21   :  { %391 = vmatpush.bf16.msra.mxu1 %v643_v38  ;;  %378 = vmatmul.bf16.vlgmr.msra.gmra.mxu0 %v453_v42 }
  0x22   :  { %426 = vmatpush.bf16.msrb.mxu0 %v674_v29  ;;  %406 = vmatmul.bf16.vlgmr.msra.gmra.mxu2 %v461_v41 }
  0x23   :  { %420 = vmatmul.bf16.vlgmr.msra.gmra.mxu3 %v465_v43 }
  0x24   :  { %392 = vmatmul.bf16.vlgmr.msra.gmra.mxu1 %v457_v45 }
  0x26   :  { %427 = vmatpush.bf16.msrb.mxu0 %v673_v44 }
  0x2a   :  { %428 = vmatpush.bf16.msrb.mxu0 %v672_v46 }
  0x2e   :  { %429 = vmatpush.bf16.msrb.mxu0 %v671_v47 }
  0x32   :  { %430 = vmatpush.bf16.msrb.mxu0 %v670_v48 }
  0x36   :  { %431 = vmatpush.bf16.msrb.mxu0 %v669_v49 }
  0x3a   :  { %432 = vmatpush.bf16.msrb.mxu0 %v668_v50 }
  0x3e   :  { %433 = vmatpush.bf16.msrb.mxu0 %v667_v51 }
  0x41   :  { %434 = vmatmul.bf16.vlgmr.msrb.gmra.mxu0 %v469_v54 }
  0x9e   :  { %v379_v55 = vpop.f32.mrf.mxu0 }
  0x9f   :  { %v380_v60 = vadd.f32 %v680_v57, %v379_v55 }
  0xa1   :  { %v393_v56 = vpop.f32.mrf.mxu1 }
  0xa2   :  { %v394_v0 = vadd.f32 %v393_v56, %v380_v60 }
  0xa5   :  { %v407_v58 = vpop.f32.mrf.mxu2 }
  0xa6   :  { %v381_v59 = vpop.f32.mrf.mxu0  ;;  %v421_v61 = vpop.f32.mrf.mxu3  ;;  %v408_v4 = vadd.f32 %v407_v58, %v394_v0 }
  0xa7   :  { %v382_v62 = vadd.f32 %v680_v57, %v381_v59 }
  0xa8   :  { %v422_v7 = vadd.f32 %v421_v61, %v408_v4 }
  0xa9   :  { %v395_v63 = vpop.f32.mrf.mxu1 }
  0xaa   :  { %v396_v1 = vadd.f32 %v395_v63, %v382_v62 }
  0xad   :  { %v409_v2 = vpop.f32.mrf.mxu2 }
  0xae   :  { %v410_v5 = vadd.f32 %v409_v2, %v396_v1  ;;  %v423_v6 = vpop.f32.mrf.mxu3 }
  0xb0   :  { %v424_v8 = vadd.f32 %v423_v6, %v410_v5 }
  0xbe   :  { %v435_v3 = vpop.f32.mrf.mxu0 }
  0xbf   :  { %v436_v9 = vadd.f32 %v435_v3, %v422_v7 }
  0xc1   :  { %v440_v12 = vmax.f32 %v436_v9, 0.0 }
  0xc6   :  { %v437_v10 = vpop.f32.mrf.mxu0 }
  0xc7   :  { %v438_v11 = vadd.f32 %v437_v10, %v424_v8 }
  0xc9   :  { %v441_v13 = vmax.f32 %v438_v11, 0.0 }
  0xcb   :  { %v678_v14 = vpack.c.bf16 %v441_v13, %v440_v12 }
  0xcd   :  { %679 = vst [vmem:[%s860_s3] sm:$0xff] %v678_v14  }

// kernel: dqn_forward.7
= control target key start
LH: loop header
LB: loop body
LE: loop exit
PB: predicated region body
PF: predicated region fallthrough
CT: control target
= control target key end

     0   :  { %s1915_s1 = inlined_call_operand.vmem [shape: bf16[256,512], index: 1, kind: input, shape index: {}]   ;;  %s1916_s0 = inlined_call_operand.vmem [shape: bf16[16,256], index: 0, kind: input, shape index: {}]   ;;  %s1917_s3 = inlined_call_operand.vmem [shape: bf16[512,128], index: 3, kind: input, shape index: {}]   ;;  %s1918_s4 = inlined_call_operand.vmem [shape: f32[1,128], index: 4, kind: input, shape index: {}]   ;;  %s1919_s2 = inlined_call_operand.vmem [shape: f32[1,512], index: 2, kind: input, shape index: {}]   ;;  %s1920_s5 = inlined_call_operand.vmem [shape: f32[16,128], index: 5, kind: output, shape index: {}]  }
   0x1   :  { %v994_v0 = vld [vmem:[%s1915_s1 + $0xe0] sm:$0xf]  ;;  %v1296_v1 = vld [vmem:[%s1915_s1 + $0xec] sm:$0xf0]  ;;  %v1294_v5 = vld [vmem:[%s1915_s1 + $0xe4] sm:$0xf] }
   0x2   :  { %v1122_v2 = vld [vmem:[%s1915_s1 + $0x1e0] sm:$0xf]  ;;  %v995_v3 = vor.u32 %v1296_v1, %v994_v0  ;;  %v1328_v4 = vld [vmem:[%s1915_s1 + $0x1ec] sm:$0xf0]  ;;  %v996_v6 = vld [vmem:[%s1915_s1 + $0xf0] sm:$0xf0] }
   0x3   :  { %v1123_v7 = vor.u32 %v1328_v4, %v1122_v2  ;;  %v999_v8 = vor.u32 %v1294_v5, %v996_v6  ;;  %v1326_v9 = vld [vmem:[%s1915_s1 + $0x1e4] sm:$0xf]  ;;  %v1124_v10 = vld [vmem:[%s1915_s1 + $0x1f0] sm:$0xf0]  ;;  %v978_v11 = vld [vmem:[%s1915_s1 + $0xc0] sm:$0xf] }
   0x4   :  { %426 = vmatpush.bf16.msra.mxu0 %v995_v3  ;;  %v1127_v12 = vor.u32 %v1326_v9, %v1124_v10  ;;  %v1292_v13 = vld [vmem:[%s1915_s1 + $0xcc] sm:$0xf0]  ;;  %v1106_v14 = vld [vmem:[%s1915_s1 + $0x1c0] sm:$0xf]  ;;  %v1290_v18 = vld [vmem:[%s1915_s1 + $0xc4] sm:$0xf] }
   0x5   :  { %v1324_v15 = vld [vmem:[%s1915_s1 + $0x1cc] sm:$0xf0]  ;;  %440 = vmatpush.bf16.msra.mxu1 %v1123_v7  ;;  %454 = vmatpush.bf16.msra.mxu2 %v999_v8  ;;  %v979_v16 = vor.u32 %v1292_v13, %v978_v11  ;;  %v980_v19 = vld [vmem:[%s1915_s1 + $0xd0] sm:$0xf0]  ;;  %v1322_v20 = vld [vmem:[%s1915_s1 + $0x1c4] sm:$0xf] }
   0x6   :  { %v1107_v17 = vor.u32 %v1324_v15, %v1106_v14  ;;  %468 = vmatpush.bf16.msra.mxu3 %v1127_v12  ;;  %v983_v21 = vor.u32 %v1290_v18, %v980_v19  ;;  %v1108_v22 = vld [vmem:[%s1915_s1 + $0x1d0] sm:$0xf0]  ;;  %v962_v23 = vld [vmem:[%s1915_s1 + $0xa0] sm:$0xf]  ;;  %v1288_v24 = vld [vmem:[%s1915_s1 + $0xac] sm:$0xf0] }
   0x7   :  { %v1111_v25 = vor.u32 %v1322_v20, %v1108_v22  ;;  %v1090_v26 = vld [vmem:[%s1915_s1 + $0x1a0] sm:$0xf]  ;;  %v1320_v27 = vld [vmem:[%s1915_s1 + $0x1ac] sm:$0xf0]  ;;  %v1286_v28 = vld [vmem:[%s1915_s1 + $0xa4] sm:$0xf]  ;;  %v963_v29 = vor.u32 %v1288_v24, %v962_v23 }
   0x8   :  { %427 = vmatpush.bf16.msra.mxu0 %v979_v16  ;;  %v964_v30 = vld [vmem:[%s1915_s1 + $0xb0] sm:$0xf0]  ;;  %v1318_v31 = vld [vmem:[%s1915_s1 + $0x1a4] sm:$0xf]  ;;  %v1091_v33 = vor.u32 %v1320_v27, %v1090_v26  ;;  %v946_v35 = vld [vmem:[%s1915_s1 + $0x80] sm:$0xf] }
   0x9   :  { %v1092_v32 = vld [vmem:[%s1915_s1 + $0x1b0] sm:$0xf0]  ;;  %441 = vmatpush.bf16.msra.mxu1 %v1107_v17  ;;  %455 = vmatpush.bf16.msra.mxu2 %v983_v21  ;;  %v967_v34 = vor.u32 %v1286_v28, %v964_v30  ;;  %v1284_v36 = vld [vmem:[%s1915_s1 + $0x8c] sm:$0xf0]  ;;  %v1074_v37 = vld [vmem:[%s1915_s1 + $0x180] sm:$0xf] }
   0xa   :  { %469 = vmatpush.bf16.msra.mxu3 %v1111_v25  ;;  %v1095_v38 = vor.u32 %v1318_v31, %v1092_v32  ;;  %v1316_v39 = vld [vmem:[%s1915_s1 + $0x18c] sm:$0xf0]  ;;  %v1282_v40 = vld [vmem:[%s1915_s1 + $0x84] sm:$0xf]  ;;  %v948_v41 = vld [vmem:[%s1915_s1 + $0x90] sm:$0xf0]  ;;  %v947_v44 = vor.u32 %v1284_v36, %v946_v35 }
   0xb   :  { %v1314_v42 = vld [vmem:[%s1915_s1 + $0x184] sm:$0xf]  ;;  %v1076_v43 = vld [vmem:[%s1915_s1 + $0x190] sm:$0xf0]  ;;  %v1075_v45 = vor.u32 %v1316_v39, %v1074_v37  ;;  %v951_v46 = vor.u32 %v1282_v40, %v948_v41  ;;  %v930_v47 = vld [vmem:[%s1915_s1 + $0x60] sm:$0xf] }
   0xc   :  { %428 = vmatpush.bf16.msra.mxu0 %v963_v29  ;;  %v1280_v48 = vld [vmem:[%s1915_s1 + $0x6c] sm:$0xf0]  ;;  %v1058_v49 = vld [vmem:[%s1915_s1 + $0x160] sm:$0xf]  ;;  %v1079_v50 = vor.u32 %v1314_v42, %v1076_v43  ;;  %v1278_v52 = vld [vmem:[%s1915_s1 + $0x64] sm:$0xf] }
   0xd   :  { %442 = vmatpush.bf16.msra.mxu1 %v1091_v33  ;;  %456 = vmatpush.bf16.msra.mxu2 %v967_v34  ;;  %v1312_v51 = vld [vmem:[%s1915_s1 + $0x16c] sm:$0xf0]  ;;  %v932_v53 = vld [vmem:[%s1915_s1 + $0x70] sm:$0xf0]  ;;  %v1310_v54 = vld [vmem:[%s1915_s1 + $0x164] sm:$0xf]  ;;  %v931_v56 = vor.u32 %v1280_v48, %v930_v47 }
   0xe   :  { %470 = vmatpush.bf16.msra.mxu3 %v1095_v38  ;;  %v1060_v55 = vld [vmem:[%s1915_s1 + $0x170] sm:$0xf0]  ;;  %v1059_v57 = vor.u32 %v1312_v51, %v1058_v49  ;;  %v935_v58 = vor.u32 %v1278_v52, %v932_v53  ;;  %v914_v59 = vld [vmem:[%s1915_s1 + $0x40] sm:$0xf]  ;;  %v1276_v60 = vld [vmem:[%s1915_s1 + $0x4c] sm:$0xf0] }
   0xf   :  { %v1042_v61 = vld [vmem:[%s1915_s1 + $0x140] sm:$0xf]  ;;  %v1063_v62 = vor.u32 %v1310_v54, %v1060_v55  ;;  %v1308_v63 = vld [vmem:[%s1915_s1 + $0x14c] sm:$0xf0]  ;;  %v1274_v0 = vld [vmem:[%s1915_s1 + $0x44] sm:$0xf]  ;;  %v915_v4 = vor.u32 %v1276_v60, %v914_v59 }
  0x10   :  { %429 = vmatpush.bf16.msra.mxu0 %v947_v44  ;;  %v916_v1 = vld [vmem:[%s1915_s1 + $0x50] sm:$0xf0]  ;;  %v1306_v2 = vld [vmem:[%s1915_s1 + $0x144] sm:$0xf]  ;;  %v1043_v5 = vor.u32 %v1308_v63, %v1042_v61  ;;  %v898_v7 = vld [vmem:[%s1915_s1 + $0x20] sm:$0xf] }
  0x11   :  { %443 = vmatpush.bf16.msra.mxu1 %v1075_v45  ;;  %457 = vmatpush.bf16.msra.mxu2 %v951_v46  ;;  %v1044_v3 = vld [vmem:[%s1915_s1 + $0x150] sm:$0xf0]  ;;  %v919_v6 = vor.u32 %v1274_v0, %v916_v1  ;;  %v1272_v8 = vld [vmem:[%s1915_s1 + $0x2c] sm:$0xf0]  ;;  %v1026_v9 = vld [vmem:[%s1915_s1 + $0x120] sm:$0xf] }
  0x12   :  { %471 = vmatpush.bf16.msra.mxu3 %v1079_v50  ;;  %v1047_v10 = vor.u32 %v1306_v2, %v1044_v3  ;;  %v1304_v11 = vld [vmem:[%s1915_s1 + $0x12c] sm:$0xf0]  ;;  %v1270_v12 = vld [vmem:[%s1915_s1 + $0x24] sm:$0xf]  ;;  %v900_v13 = vld [vmem:[%s1915_s1 + $0x30] sm:$0xf0]  ;;  %v899_v16 = vor.u32 %v1272_v8, %v898_v7 }
  0x13   :  { %v1302_v14 = vld [vmem:[%s1915_s1 + $0x124] sm:$0xf]  ;;  %v1028_v15 = vld [vmem:[%s1915_s1 + $0x130] sm:$0xf0]  ;;  %v882_v17 = vld [vmem:[%s1915_s1] sm:$0xf]  ;;  %v1027_v20 = vor.u32 %v1304_v11, %v1026_v9  ;;  %v903_v21 = vor.u32 %v1270_v12, %v900_v13 }
  0x14   :  { %430 = vmatpush.bf16.msra.mxu0 %v931_v56  ;;  %v1268_v18 = vld [vmem:[%s1915_s1 + $0xc] sm:$0xf0]  ;;  %v1010_v19 = vld [vmem:[%s1915_s1 + $0x100] sm:$0xf]  ;;  %v1266_v23 = vld [vmem:[%s1915_s1 + $0x4] sm:$0xf]  ;;  %v1031_v25 = vor.u32 %v1302_v14, %v1028_v15 }
  0x15   :  { %444 = vmatpush.bf16.msra.mxu1 %v1059_v57  ;;  %458 = vmatpush.bf16.msra.mxu2 %v935_v58  ;;  %v1300_v22 = vld [vmem:[%s1915_s1 + $0x10c] sm:$0xf0]  ;;  %v884_v24 = vld [vmem:[%s1915_s1 + $0x10] sm:$0xf0]  ;;  %v1298_v26 = vld [vmem:[%s1915_s1 + $0x104] sm:$0xf]  ;;  %v883_v32 = vor.u32 %v1268_v18, %v882_v17 }
  0x16   :  { %472 = vmatpush.bf16.msra.mxu3 %v1063_v62  ;;  %v1012_v27 = vld [vmem:[%s1915_s1 + $0x110] sm:$0xf0]  ;;  %v1002_v28 = vld [vmem:[%s1915_s1 + $0xe8] sm:$0xf]  ;;  %v1297_v29 = vld [vmem:[%s1915_s1 + $0xf4] sm:$0xf0]  ;;  %v1011_v36 = vor.u32 %v1300_v22, %v1010_v19  ;;  %v887_v37 = vor.u32 %v1266_v23, %v884_v24 }
  0x17   :  { %v1130_v30 = vld [vmem:[%s1915_s1 + $0x1e8] sm:$0xf]  ;;  %v1329_v31 = vld [vmem:[%s1915_s1 + $0x1f4] sm:$0xf0]  ;;  %v1295_v33 = vld [vmem:[%s1915_s1 + $0xec] sm:$0xf]  ;;  %v1015_v41 = vor.u32 %v1298_v26, %v1012_v27  ;;  %v1003_v42 = vor.u32 %v1297_v29, %v1002_v28 }
  0x18   :  { %431 = vmatpush.bf16.msra.mxu0 %v915_v4  ;;  %v1004_v34 = vld [vmem:[%s1915_s1 + $0xf8] sm:$0xf0]  ;;  %v1327_v35 = vld [vmem:[%s1915_s1 + $0x1ec] sm:$0xf]  ;;  %v874_v39 = vld [vmem:[%s1916_s0] sm:$0xf]  ;;  %v1131_v45 = vor.u32 %v1329_v31, %v1130_v30 }
  0x19   :  { %445 = vmatpush.bf16.msra.mxu1 %v1043_v5  ;;  %459 = vmatpush.bf16.msra.mxu2 %v919_v6  ;;  %v1132_v38 = vld [vmem:[%s1915_s1 + $0x1f8] sm:$0xf0]  ;;  %v1265_v40 = vld [vmem:[%s1916_s0 + $0x4] sm:$0xf0]  ;;  %v1264_v43 = vld [vmem:[%s1916_s0 + $0x4] sm:$0xf]  ;;  %v1007_v46 = vor.u32 %v1295_v33, %v1004_v34 }
  0x1a   :  { %473 = vmatpush.bf16.msra.mxu3 %v1047_v10  ;;  %v876_v44 = vld [vmem:[%s1916_s0 + $0x8] sm:$0xf0]  ;;  %v986_v47 = vld [vmem:[%s1915_s1 + $0xc8] sm:$0xf]  ;;  %v1293_v48 = vld [vmem:[%s1915_s1 + $0xd4] sm:$0xf0]  ;;  %v1135_v50 = vor.u32 %v1327_v35, %v1132_v38  ;;  %v1630_v51 = vor.u32 %v1265_v40, %v874_v39 }
  0x1b   :  { %v1114_v49 = vld [vmem:[%s1915_s1 + $0x1c8] sm:$0xf]  ;;  %v1325_v52 = vld [vmem:[%s1915_s1 + $0x1d4] sm:$0xf0]  ;;  %v1291_v53 = vld [vmem:[%s1915_s1 + $0xcc] sm:$0xf]  ;;  %v1641_v55 = vor.u32 %v1264_v43, %v876_v44  ;;  %v987_v58 = vor.u32 %v1293_v48, %v986_v47 }
  0x1c   :  { %432 = vmatpush.bf16.msra.mxu0 %v899_v16  ;;  %v988_v54 = vld [vmem:[%s1915_s1 + $0xd8] sm:$0xf0]  ;;  %v1323_v56 = vld [vmem:[%s1915_s1 + $0x1cc] sm:$0xf]  ;;  %v1115_v59 = vor.u32 %v1325_v52, %v1114_v49  ;;  %v970_v61 = vld [vmem:[%s1915_s1 + $0xa8] sm:$0xf] }
  0x1d   :  { %446 = vmatpush.bf16.msra.mxu1 %v1027_v20  ;;  %460 = vmatpush.bf16.msra.mxu2 %v903_v21  ;;  %v1116_v57 = vld [vmem:[%s1915_s1 + $0x1d8] sm:$0xf0]  ;;  %v991_v60 = vor.u32 %v1291_v53, %v988_v54  ;;  %v1289_v62 = vld [vmem:[%s1915_s1 + $0xb4] sm:$0xf0]  ;;  %v1098_v63 = vld [vmem:[%s1915_s1 + $0x1a8] sm:$0xf] }
  0x1e   :  { %474 = vmatpush.bf16.msra.mxu3 %v1031_v25  ;;  %v1119_v0 = vor.u32 %v1323_v56, %v1116_v57  ;;  %v1321_v1 = vld [vmem:[%s1915_s1 + $0x1b4] sm:$0xf0]  ;;  %v1287_v2 = vld [vmem:[%s1915_s1 + $0xac] sm:$0xf]  ;;  %v972_v3 = vld [vmem:[%s1915_s1 + $0xb8] sm:$0xf0]  ;;  %v971_v6 = vor.u32 %v1289_v62, %v970_v61 }
  0x1f   :  { %v1319_v4 = vld [vmem:[%s1915_s1 + $0x1ac] sm:$0xf]  ;;  %v1100_v5 = vld [vmem:[%s1915_s1 + $0x1b8] sm:$0xf0]  ;;  %v1099_v7 = vor.u32 %v1321_v1, %v1098_v63  ;;  %v975_v8 = vor.u32 %v1287_v2, %v972_v3  ;;  %v954_v9 = vld [vmem:[%s1915_s1 + $0x88] sm:$0xf] }
  0x20   :  { %433 = vmatpush.bf16.msra.mxu0 %v883_v32  ;;  %v1285_v10 = vld [vmem:[%s1915_s1 + $0x94] sm:$0xf0]  ;;  %v1082_v11 = vld [vmem:[%s1915_s1 + $0x188] sm:$0xf]  ;;  %v1103_v12 = vor.u32 %v1319_v4, %v1100_v5  ;;  %v1283_v14 = vld [vmem:[%s1915_s1 + $0x8c] sm:$0xf] }
  0x21   :  { %447 = vmatpush.bf16.msra.mxu1 %v1011_v36  ;;  %461 = vmatpush.bf16.msra.mxu2 %v887_v37  ;;  %v1317_v13 = vld [vmem:[%s1915_s1 + $0x194] sm:$0xf0]  ;;  %v956_v15 = vld [vmem:[%s1915_s1 + $0x98] sm:$0xf0]  ;;  %v1315_v16 = vld [vmem:[%s1915_s1 + $0x18c] sm:$0xf]  ;;  %v955_v18 = vor.u32 %v1285_v10, %v954_v9 }
  0x22   :  { %475 = vmatpush.bf16.msra.mxu3 %v1015_v41  ;;  %v1084_v17 = vld [vmem:[%s1915_s1 + $0x198] sm:$0xf0]  ;;  %v1083_v19 = vor.u32 %v1317_v13, %v1082_v11  ;;  %v959_v20 = vor.u32 %v1283_v14, %v956_v15  ;;  %v938_v21 = vld [vmem:[%s1915_s1 + $0x68] sm:$0xf]  ;;  %v1281_v22 = vld [vmem:[%s1915_s1 + $0x74] sm:$0xf0] }
  0x23   :  { %434 = vmatmul.bf16.vlgmr.msra.gmra.mxu0 %v1630_v51  ;;  %v1066_v23 = vld [vmem:[%s1915_s1 + $0x168] sm:$0xf]  ;;  %v1087_v24 = vor.u32 %v1315_v16, %v1084_v17  ;;  %v1313_v25 = vld [vmem:[%s1915_s1 + $0x174] sm:$0xf0]  ;;  %v1279_v26 = vld [vmem:[%s1915_s1 + $0x6c] sm:$0xf]  ;;  %v939_v30 = vor.u32 %v1281_v22, %v938_v21 }
  0x24   :  { %482 = vmatpush.bf16.msrb.mxu0 %v1003_v42  ;;  %462 = vmatmul.bf16.vlgmr.msra.gmra.mxu2 %v1630_v51  ;;  %v940_v27 = vld [vmem:[%s1915_s1 + $0x78] sm:$0xf0]  ;;  %v1311_v28 = vld [vmem:[%s1915_s1 + $0x16c] sm:$0xf]  ;;  %v1067_v31 = vor.u32 %v1313_v25, %v1066_v23  ;;  %v922_v33 = vld [vmem:[%s1915_s1 + $0x48] sm:$0xf] }
  0x25   :  { %496 = vmatpush.bf16.msrb.mxu1 %v1131_v45  ;;  %510 = vmatpush.bf16.msrb.mxu2 %v1007_v46  ;;  %v1068_v29 = vld [vmem:[%s1915_s1 + $0x178] sm:$0xf0]  ;;  %v943_v32 = vor.u32 %v1279_v26, %v940_v27  ;;  %v1277_v34 = vld [vmem:[%s1915_s1 + $0x54] sm:$0xf0]  ;;  %v1050_v35 = vld [vmem:[%s1915_s1 + $0x148] sm:$0xf] }
  0x26   :  { %524 = vmatpush.bf16.msrb.mxu3 %v1135_v50  ;;  %448 = vmatmul.bf16.vlgmr.msra.gmra.mxu1 %v1641_v55  ;;  %v1071_v36 = vor.u32 %v1311_v28, %v1068_v29  ;;  %v1309_v37 = vld [vmem:[%s1915_s1 + $0x154] sm:$0xf0]  ;;  %v1275_v38 = vld [vmem:[%s1915_s1 + $0x4c] sm:$0xf]  ;;  %v924_v39 = vld [vmem:[%s1915_s1 + $0x58] sm:$0xf0]  ;;  %v923_v42 = vor.u32 %v1277_v34, %v922_v33 }
  0x27   :  { %476 = vmatmul.bf16.vlgmr.msra.gmra.mxu3 %v1641_v55  ;;  %v1307_v40 = vld [vmem:[%s1915_s1 + $0x14c] sm:$0xf]  ;;  %v1052_v41 = vld [vmem:[%s1915_s1 + $0x158] sm:$0xf0]  ;;  %v1051_v43 = vor.u32 %v1309_v37, %v1050_v35  ;;  %v927_v44 = vor.u32 %v1275_v38, %v924_v39  ;;  %v906_v45 = vld [vmem:[%s1915_s1 + $0x28] sm:$0xf] }
  0x28   :  { %483 = vmatpush.bf16.msrb.mxu0 %v987_v58  ;;  %v1273_v46 = vld [vmem:[%s1915_s1 + $0x34] sm:$0xf0]  ;;  %v1034_v47 = vld [vmem:[%s1915_s1 + $0x128] sm:$0xf]  ;;  %v1055_v48 = vor.u32 %v1307_v40, %v1052_v41  ;;  %v1271_v50 = vld [vmem:[%s1915_s1 + $0x2c] sm:$0xf] }
  0x29   :  { %497 = vmatpush.bf16.msrb.mxu1 %v1115_v59  ;;  %511 = vmatpush.bf16.msrb.mxu2 %v991_v60  ;;  %v1305_v49 = vld [vmem:[%s1915_s1 + $0x134] sm:$0xf0]  ;;  %v908_v52 = vld [vmem:[%s1915_s1 + $0x38] sm:$0xf0]  ;;  %v1303_v53 = vld [vmem:[%s1915_s1 + $0x12c] sm:$0xf]  ;;  %v907_v56 = vor.u32 %v1273_v46, %v906_v45 }
  0x2a   :  { %525 = vmatpush.bf16.msrb.mxu3 %v1119_v0  ;;  %v1036_v54 = vld [vmem:[%s1915_s1 + $0x138] sm:$0xf0]  ;;  %v1035_v57 = vor.u32 %v1305_v49, %v1034_v47  ;;  %v911_v58 = vor.u32 %v1271_v50, %v908_v52  ;;  %v890_v59 = vld [vmem:[%s1915_s1 + $0x8] sm:$0xf]  ;;  %v1269_v60 = vld [vmem:[%s1915_s1 + $0x14] sm:$0xf0] }
  0x2b   :  { %v1018_v61 = vld [vmem:[%s1915_s1 + $0x108] sm:$0xf]  ;;  %v1039_v62 = vor.u32 %v1303_v53, %v1036_v54  ;;  %v1301_v63 = vld [vmem:[%s1915_s1 + $0x114] sm:$0xf0]  ;;  %v1267_v0 = vld [vmem:[%s1915_s1 + $0xc] sm:$0xf]  ;;  %v891_v4 = vor.u32 %v1269_v60, %v890_v59 }
  0x2c   :  { %484 = vmatpush.bf16.msrb.mxu0 %v971_v6  ;;  %v892_v1 = vld [vmem:[%s1915_s1 + $0x18] sm:$0xf0]  ;;  %v1299_v2 = vld [vmem:[%s1915_s1 + $0x10c] sm:$0xf]  ;;  %v1019_v5 = vor.u32 %v1301_v63, %v1018_v61  ;;  %v1336_v10 = vld [vmem:[%s1917_s3 + $0x30] sm:$0xff] }
  0x2d   :  { %498 = vmatpush.bf16.msrb.mxu1 %v1099_v7  ;;  %512 = vmatpush.bf16.msrb.mxu2 %v975_v8  ;;  %v1020_v3 = vld [vmem:[%s1915_s1 + $0x118] sm:$0xf0]  ;;  %v895_v6 = vor.u32 %v1267_v0, %v892_v1  ;;  %v1344_v11 = vld [vmem:[%s1917_s3 + $0x70] sm:$0xff]  ;;  %v1343_v13 = vld [vmem:[%s1917_s3 + $0x68] sm:$0xff] }
  0x2e   :  { %526 = vmatpush.bf16.msrb.mxu3 %v1103_v12  ;;  %v1023_v7 = vor.u32 %v1299_v2, %v1020_v3  ;;  %v1337_v8 = vld [vmem:[%s1917_s3 + $0x38] sm:$0xff]  ;;  %v1335_v12 = vld [vmem:[%s1917_s3 + $0x28] sm:$0xff]  ;;  %v1334_v14 = vld [vmem:[%s1917_s3 + $0x20] sm:$0xff] }
  0x2f   :  { %v1345_v9 = vld [vmem:[%s1917_s3 + $0x78] sm:$0xff]  ;;  %v1332_v15 = vld [vmem:[%s1917_s3 + $0x10] sm:$0xff]  ;;  %v1331_v17 = vld [vmem:[%s1917_s3 + $0x8] sm:$0xff] }
  0x30   :  { %485 = vmatpush.bf16.msrb.mxu0 %v955_v18  ;;  %v1341_v16 = vld [vmem:[%s1917_s3 + $0x58] sm:$0xff]  ;;  %v1340_v18 = vld [vmem:[%s1917_s3 + $0x50] sm:$0xff]  ;;  %v1339_v21 = vld [vmem:[%s1917_s3 + $0x48] sm:$0xff] }
  0x31   :  { %499 = vmatpush.bf16.msrb.mxu1 %v1083_v19  ;;  %513 = vmatpush.bf16.msrb.mxu2 %v959_v20  ;;  %v1330_v19 = vld [vmem:[%s1917_s3] sm:$0xff]  ;;  %v1353_v20 = vld [vmem:[%s1917_s3 + $0xb8] sm:$0xff]  ;;  %v1352_v22 = vld [vmem:[%s1917_s3 + $0xb0] sm:$0xff] }
  0x32   :  { %527 = vmatpush.bf16.msrb.mxu3 %v1087_v24  ;;  %v1338_v23 = vld [vmem:[%s1917_s3 + $0x40] sm:$0xff]  ;;  %v1361_v24 = vld [vmem:[%s1917_s3 + $0xf8] sm:$0xff]  ;;  %v1351_v25 = vld [vmem:[%s1917_s3 + $0xa8] sm:$0xff] }
  0x33   :  { %v1360_v26 = vld [vmem:[%s1917_s3 + $0xf0] sm:$0xff]  ;;  %v1350_v27 = vld [vmem:[%s1917_s3 + $0xa0] sm:$0xff]  ;;  %v1359_v29 = vld [vmem:[%s1917_s3 + $0xe8] sm:$0xff] }
  0x34   :  { %486 = vmatpush.bf16.msrb.mxu0 %v939_v30  ;;  %v1870_v28 = vld [vmem:[%s1919_s2] sm:$0xf]  ;;  %v1349_v30 = vld [vmem:[%s1917_s3 + $0x98] sm:$0xff]  ;;  %v1348_v35 = vld [vmem:[%s1917_s3 + $0x90] sm:$0xff] }
  0x35   :  { %500 = vmatpush.bf16.msrb.mxu1 %v1067_v31  ;;  %514 = vmatpush.bf16.msrb.mxu2 %v943_v32  ;;  %v88_v31 = vperm.slane %v1870_v28, 0  ;;  %v1358_v33 = vld [vmem:[%s1917_s3 + $0xe0] sm:$0xff]  ;;  %v89_v37 = vperm.slane %v1870_v28, 1  ;;  %v1357_v38 = vld [vmem:[%s1917_s3 + $0xd8] sm:$0xff]  ;;  %v1347_v41 = vld [vmem:[%s1917_s3 + $0x88] sm:$0xff]  ;;  %v90_v2 = vperm.slane %v1870_v28, 2 }
  0x36   :  { %528 = vmatpush.bf16.msrb.mxu3 %v1071_v36  ;;  %v1356_v45 = vld [vmem:[%s1917_s3 + $0xd0] sm:$0xff]  ;;  %v1355_v53 = vld [vmem:[%s1917_s3 + $0xc8] sm:$0xff] }
  0x38   :  { %487 = vmatpush.bf16.msrb.mxu0 %v923_v42 }
  0x39   :  { %501 = vmatpush.bf16.msrb.mxu1 %v1051_v43  ;;  %515 = vmatpush.bf16.msrb.mxu2 %v927_v44 }
  0x3a   :  { %529 = vmatpush.bf16.msrb.mxu3 %v1055_v48  ;;  %v1346_v48 = vld [vmem:[%s1917_s3 + $0x80] sm:$0xff] }
  0x3c   :  { %488 = vmatpush.bf16.msrb.mxu0 %v907_v56 }
  0x3d   :  { %502 = vmatpush.bf16.msrb.mxu1 %v1035_v57  ;;  %516 = vmatpush.bf16.msrb.mxu2 %v911_v58 }
  0x3e   :  { %530 = vmatpush.bf16.msrb.mxu3 %v1039_v62  ;;  %v1354_v62 = vld [vmem:[%s1917_s3 + $0xc0] sm:$0xff] }
  0x40   :  { %489 = vmatpush.bf16.msrb.mxu0 %v891_v4 }
  0x41   :  { %503 = vmatpush.bf16.msrb.mxu1 %v1019_v5  ;;  %517 = vmatpush.bf16.msrb.mxu2 %v895_v6  ;;  %v91_v6 = vperm.slane %v1870_v28, 3 }
  0x42   :  { %531 = vmatpush.bf16.msrb.mxu3 %v1023_v7 }
  0x43   :  { %490 = vmatmul.bf16.vlgmr.msrb.gmra.mxu0 %v1630_v51 }
  0x44   :  { %810 = vmatpush.bf16.msra.mxu0 %v1337_v8  ;;  %504 = vmatmul.bf16.vlgmr.msrb.gmra.mxu1 %v1641_v55 }
  0x45   :  { %824 = vmatpush.bf16.msra.mxu1 %v1345_v9  ;;  %518 = vmatmul.bf16.vlgmr.msrb.gmra.mxu2 %v1630_v51  ;;  %v1333_v51 = vld [vmem:[%s1917_s3 + $0x18] sm:$0xff] }
  0x46   :  { %532 = vmatmul.bf16.vlgmr.msrb.gmra.mxu3 %v1641_v55  ;;  %v1342_v55 = vld [vmem:[%s1917_s3 + $0x60] sm:$0xff]  ;;  %838 = vmatpush.bf16.msra.mxu2 %v1353_v20 }
  0x47   :  { %852 = vmatpush.bf16.msra.mxu3 %v1361_v24 }
  0x48   :  { %811 = vmatpush.bf16.msra.mxu0 %v1336_v10 }
  0x49   :  { %825 = vmatpush.bf16.msra.mxu1 %v1344_v11 }
  0x4a   :  { %839 = vmatpush.bf16.msra.mxu2 %v1352_v22 }
  0x4b   :  { %853 = vmatpush.bf16.msra.mxu3 %v1360_v26 }
  0x4c   :  { %812 = vmatpush.bf16.msra.mxu0 %v1335_v12 }
  0x4d   :  { %826 = vmatpush.bf16.msra.mxu1 %v1343_v13 }
  0x4e   :  { %840 = vmatpush.bf16.msra.mxu2 %v1351_v25 }
  0x4f   :  { %854 = vmatpush.bf16.msra.mxu3 %v1359_v29 }
  0x50   :  { %813 = vmatpush.bf16.msra.mxu0 %v1334_v14 }
  0x51   :  { %827 = vmatpush.bf16.msra.mxu1 %v1342_v55 }
  0x52   :  { %841 = vmatpush.bf16.msra.mxu2 %v1350_v27 }
  0x53   :  { %855 = vmatpush.bf16.msra.mxu3 %v1358_v33 }
  0x54   :  { %814 = vmatpush.bf16.msra.mxu0 %v1333_v51 }
  0x55   :  { %828 = vmatpush.bf16.msra.mxu1 %v1341_v16 }
  0x56   :  { %842 = vmatpush.bf16.msra.mxu2 %v1349_v30 }
  0x57   :  { %856 = vmatpush.bf16.msra.mxu3 %v1357_v38 }
  0x58   :  { %815 = vmatpush.bf16.msra.mxu0 %v1332_v15 }
  0x59   :  { %829 = vmatpush.bf16.msra.mxu1 %v1340_v18 }
  0x5a   :  { %843 = vmatpush.bf16.msra.mxu2 %v1348_v35 }
  0x5b   :  { %857 = vmatpush.bf16.msra.mxu3 %v1356_v45 }
  0x5c   :  { %816 = vmatpush.bf16.msra.mxu0 %v1331_v17 }
  0x5d   :  { %830 = vmatpush.bf16.msra.mxu1 %v1339_v21 }
  0x5e   :  { %844 = vmatpush.bf16.msra.mxu2 %v1347_v41 }
  0x5f   :  { %858 = vmatpush.bf16.msra.mxu3 %v1355_v53 }
  0x60   :  { %817 = vmatpush.bf16.msra.mxu0 %v1330_v19 }
  0x61   :  { %831 = vmatpush.bf16.msra.mxu1 %v1338_v23  ;;  %v1362_v23 = vld [vmem:[%s1918_s4] ss:$0 sm:$0xff] }
  0x62   :  { %845 = vmatpush.bf16.msra.mxu2 %v1346_v48 }
  0x63   :  { %859 = vmatpush.bf16.msra.mxu3 %v1354_v62 }
  0xa0   :  { %v435_v32 = vpop.f32.mrf.mxu0 }
  0xa1   :  { %v436_v36 = vadd.f32 %v435_v32, %v88_v31 }
  0xa3   :  { %v449_v34 = vpop.f32.mrf.mxu1 }
  0xa4   :  { %v450_v42 = vadd.f32 %v449_v34, %v436_v36 }
  0xa6   :  { %v538_v49 = vmax.f32 %v450_v42, 0.0 }
  0xa7   :  { %v463_v39 = vpop.f32.mrf.mxu2 }
  0xa8   :  { %v464_v43 = vadd.f32 %v463_v39, %v89_v37  ;;  %v437_v44 = vpop.f32.mrf.mxu0 }
  0xa9   :  { %v438_v46 = vadd.f32 %v437_v44, %v88_v31 }
  0xaa   :  { %v477_v40 = vpop.f32.mrf.mxu3 }
  0xab   :  { %v451_v47 = vpop.f32.mrf.mxu1  ;;  %v478_v52 = vadd.f32 %v477_v40, %v464_v43 }
  0xac   :  { %v452_v50 = vadd.f32 %v451_v47, %v438_v46 }
  0xad   :  { %v539_v60 = vmax.f32 %v478_v52, 0.0 }
  0xae   :  { %v542_v54 = vmax.f32 %v452_v50, 0.0 }
  0xaf   :  { %v465_v56 = vpop.f32.mrf.mxu2 }
  0xb0   :  { %v466_v57 = vadd.f32 %v465_v56, %v89_v37  ;;  %v546_v59 = vpack.c.bf16 %v542_v54, %v538_v49 }
  0xb2   :  { %v479_v58 = vpop.f32.mrf.mxu3  ;;  %818 = vmatmul.bf16.vlgmr.msra.gmra.mxu0 %v546_v59 }
  0xb3   :  { %v480_v61 = vadd.f32 %v479_v58, %v466_v57 }
  0xb5   :  { %v543_v63 = vmax.f32 %v480_v61, 0.0 }
  0xb7   :  { %v547_v0 = vpack.c.bf16 %v543_v63, %v539_v60 }
  0xb9   :  { %832 = vmatmul.bf16.vlgmr.msra.gmra.mxu1 %v547_v0 }
  0xc0   :  { %v491_v1 = vpop.f32.mrf.mxu0 }
  0xc1   :  { %v505_v3 = vpop.f32.mrf.mxu1  ;;  %v492_v4 = vadd.f32 %v491_v1, %v90_v2 }
  0xc3   :  { %v506_v9 = vadd.f32 %v505_v3, %v492_v4 }
  0xc5   :  { %v540_v14 = vmax.f32 %v506_v9, 0.0 }
  0xc8   :  { %v519_v5 = vpop.f32.mrf.mxu2  ;;  %v493_v8 = vpop.f32.mrf.mxu0 }
  0xc9   :  { %v533_v7 = vpop.f32.mrf.mxu3  ;;  %v494_v10 = vadd.f32 %v493_v8, %v90_v2  ;;  %v507_v11 = vpop.f32.mrf.mxu1  ;;  %v520_v13 = vadd.f32 %v519_v5, %v91_v6 }
  0xcb   :  { %v508_v12 = vadd.f32 %v507_v11, %v494_v10  ;;  %v534_v16 = vadd.f32 %v533_v7, %v520_v13 }
  0xcd   :  { %v544_v51 = vmax.f32 %v508_v12, 0.0  ;;  %v541_v20 = vmax.f32 %v534_v16, 0.0 }
  0xcf   :  { %v548_v55 = vpack.c.bf16 %v544_v51, %v540_v14 }
  0xd0   :  { %v521_v15 = vpop.f32.mrf.mxu2 }
  0xd1   :  { %v522_v17 = vadd.f32 %v521_v15, %v91_v6  ;;  %v535_v18 = vpop.f32.mrf.mxu3  ;;  %846 = vmatmul.bf16.vlgmr.msra.gmra.mxu2 %v548_v55 }
  0xd3   :  { %v536_v19 = vadd.f32 %v535_v18, %v522_v17 }
  0xd5   :  { %v545_v21 = vmax.f32 %v536_v19, 0.0 }
  0xd7   :  { %v549_v22 = vpack.c.bf16 %v545_v21, %v541_v20 }
  0xd9   :  { %860 = vmatmul.bf16.vlgmr.msra.gmra.mxu3 %v549_v22 }
 0x12f   :  { %v819_v24 = vpop.f32.mrf.mxu0 }
 0x130   :  { %v820_v26 = vadd.f32 %v1362_v23, %v819_v24 }
 0x136   :  { %v833_v25 = vpop.f32.mrf.mxu1 }
 0x137   :  { %v834_v28 = vadd.f32 %v833_v25, %v820_v26  ;;  %v821_v30 = vpop.f32.mrf.mxu0 }
 0x138   :  { %v822_v34 = vadd.f32 %v1362_v23, %v821_v30 }
 0x13e   :  { %v835_v33 = vpop.f32.mrf.mxu1 }
 0x13f   :  { %v836_v36 = vadd.f32 %v835_v33, %v822_v34 }
 0x154   :  { %v847_v27 = vpop.f32.mrf.mxu2 }
 0x155   :  { %v848_v29 = vadd.f32 %v847_v27, %v834_v28 }
 0x15c   :  { %v861_v31 = vpop.f32.mrf.mxu3  ;;  %v849_v35 = vpop.f32.mrf.mxu2 }
 0x15d   :  { %v862_v32 = vadd.f32 %v861_v31, %v848_v29  ;;  %v850_v37 = vadd.f32 %v849_v35, %v836_v36 }
 0x15f   :  { %866 = vst [vmem:[%s1920_s5] sm:$0xff] %v862_v32 }
 0x164   :  { %v863_v38 = vpop.f32.mrf.mxu3 }
 0x165   :  { %v864_v39 = vadd.f32 %v863_v38, %v850_v37 }
 0x167   :  { %867 = vst [vmem:[%s1920_s5 + $0x8] sm:$0xff] %v864_v39 }

</bundles_post_ra>
